<compile_context>
chip_gen: v7x
topology: tpu7x:2x2x1
jax: 0.10.0
libtpu: 0.0.40
codegen_flags: <defaults>
</compile_context>

<pallas_src>
import functools

import jax
import jax.numpy as jnp
from jax import lax
from jax.experimental import pallas as pl
from jax.experimental.pallas import tpu as pltpu

HIDDEN = 32  # hidden_channels


# ----------------------------------------------------------------------------
# Static slab layouts (row offsets 8-aligned; every block is lane-dense).
# ----------------------------------------------------------------------------
def _round8(r):
    return ((r + 7) // 8) * 8


_SLAB_A_BLOCKS = (          # (name, block rows = contraction dim seen in-kernel)
    ("c1_wl", 4), ("c1_wr", 4), ("c1_b", 1),
    ("c2_wl", 128), ("c2_wr", 128), ("c2_b", 1),
    ("c3_wl", 128), ("c3_wr", 128), ("c3_b", 1),
    ("wi", 128), ("bi", 1),
    ("w2", 512), ("b2", 1),
    ("w3", 128), ("b3", 1),
    ("wo", 128), ("bo", 1),
)
_SLAB_B_BLOCKS = (("w1_im", 128), ("w1_goal", 3), ("b1", 1))


def _make_layout(blocks):
    layout, off = {}, 0
    for name, rows in blocks:
        layout[name] = (off, rows)
        off += _round8(rows)
    return layout, off


_LAYOUT_A, _ROWS_A = _make_layout(_SLAB_A_BLOCKS)
_LAYOUT_B, _ROWS_B = _make_layout(_SLAB_B_BLOCKS)


def _vmem_specs(n):
    return [pl.BlockSpec(memory_space=pltpu.MemorySpace.VMEM) for _ in range(n)]


# ----------------------------------------------------------------------------
# Single fused kernel: adj/pool build -> 3x SAGEConv -> global_mean_pool ->
# importance -> L2 normalize -> MLP head (BN folded, dropout identity).
# ----------------------------------------------------------------------------
def gnn_fused_kernel(x_ref, ei_ref, batch_ref, goal_ref, pa_ref, pb_ref, out_ref,
                     *, n, num_graphs, layout_a, layout_b):
    f32 = jnp.float32

    def A(name):
        off, rows = layout_a[name]
        return pa_ref[off:off + rows, :]

    def B(name):
        off, rows = layout_b[name]
        return pb_ref[off:off + rows, :]

    # ---- adjacency (row-normalized mean aggregation) and mean-pool matrices,
    #      built in-kernel from integer indices (no XLA scatter in the wrapper).
    node_ids = lax.broadcasted_iota(jnp.int32, (n, 1), 0)               # [N,1]
    src_oh = (ei_ref[0:1, :] == node_ids).astype(f32)                   # [N,E]
    dst_oh = (ei_ref[1:2, :] == node_ids).astype(f32)                   # [N,E]
    # adj[i,j] = #edges j->i  (== dst_oh @ src_oh^T)
    adj = lax.dot_general(dst_oh, src_oh, (((1,), (1,)), ((), ())),
                          preferred_element_type=f32)                    # [N,N]
    adj = adj / jnp.maximum(jnp.sum(adj, axis=-1, keepdims=True), 1.0)

    graph_ids = lax.broadcasted_iota(jnp.int32, (num_graphs, 1), 0)     # [B,1]
    pool = (batch_ref[0:1, :] == graph_ids).astype(f32)                 # [B,N]
    pool = pool / jnp.maximum(jnp.sum(pool, axis=-1, keepdims=True), 1.0)

    # ---- SAGEConv: out = (mean_neighbors(h)) @ Wl + h @ Wr + b  (no concat)
    def sage(h, wl, wr, b, apply_relu):
        agg = jnp.dot(adj, h, preferred_element_type=f32)
        out = (jnp.dot(agg, wl, preferred_element_type=f32)
               + jnp.dot(h, wr, preferred_element_type=f32) + b)
        return jnp.maximum(out, 0.0) if apply_relu else out

    h = sage(x_ref[...], A("c1_wl"), A("c1_wr"), A("c1_b"), True)        # [N,128]
    h = sage(h, A("c2_wl"), A("c2_wr"), A("c2_b"), True)                 # [N,128]
    h = sage(h, A("c3_wl"), A("c3_wr"), A("c3_b"), False)                # [N,128]

    # ---- global_mean_pool
    xg = jnp.dot(pool, h, preferred_element_type=f32)                    # [B,128]

    # ---- importance + F.normalize(p=2, eps=1e-12); real values live in lanes 0..5
    imp = jnp.dot(xg, A("wi"), preferred_element_type=f32) + A("bi")     # [B,128]
    sumsq = jnp.sum(imp * imp, axis=-1, keepdims=True)                   # padding is 0
    im = imp * lax.rsqrt(jnp.maximum(sumsq, 1e-24))                      # lanes 0..5

    # ---- layer_1 on cat([|im|, goal]) via split weights; BN1 folded; ReLU
    x1 = (jnp.dot(jnp.abs(im), B("w1_im"), preferred_element_type=f32)
          + jnp.dot(goal_ref[...], B("w1_goal"), preferred_element_type=f32)
          + B("b1"))
    x1 = jnp.maximum(x1, 0.0)                                            # [B,512]

    # ---- layer_2 (+ folded BN2) + ReLU; dropout = identity
    x2 = jnp.maximum(jnp.dot(x1, A("w2"), preferred_element_type=f32) + A("b2"), 0.0)
    # ---- layer_3 (+ folded BN3) + ReLU; dropout = identity
    x3 = jnp.maximum(jnp.dot(x2, A("w3"), preferred_element_type=f32) + A("b3"), 0.0)
    # ---- layer_out; real values live in lanes 6..10
    label = jnp.dot(x3, A("wo"), preferred_element_type=f32) + A("bo")   # [B,128]

    # One unmasked, lane-dense store: im in lanes 0..5, label in lanes 6..10.
    out_ref[...] = im + label


# ----------------------------------------------------------------------------
# Parameter construction (deterministic, PyTorch-like uniform init) + packing.
# ----------------------------------------------------------------------------
def _linear(key, fan_in, fan_out):
    kw, kb = jax.random.split(key)
    bound = 1.0 / jnp.sqrt(jnp.float32(fan_in))
    w = jax.random.uniform(kw, (fan_in, fan_out), jnp.float32, -bound, bound)
    b = jax.random.uniform(kb, (1, fan_out), jnp.float32, -bound, bound)
    return w, b


def _bn_fold(num_features, eps=1e-5):
    # gamma=1, beta=0, running_mean=0, running_var=1 (fresh-module defaults, eval mode)
    gamma = jnp.ones((1, num_features), jnp.float32)
    beta = jnp.zeros((1, num_features), jnp.float32)
    rm = jnp.zeros((1, num_features), jnp.float32)
    rv = jnp.ones((1, num_features), jnp.float32)
    scale = gamma / jnp.sqrt(rv + eps)
    shift = beta - rm * scale
    return scale, shift


def _pack(layout, total_rows, cols, tensors):
    slab = jnp.zeros((total_rows, cols), jnp.float32)
    for name, (arr, col_off) in tensors.items():
        off, _ = layout[name]
        r, c = arr.shape
        slab = slab.at[off:off + r, col_off:col_off + c].set(arr)
    return slab


def make_params(seed=12345):
    keys = jax.random.split(jax.random.PRNGKey(seed), 11)
    # SAGEConv: lin_l (aggregated neighbors, with bias) + lin_r (root, no bias).
    c1_wl, c1_b = _linear(keys[0], 4, HIDDEN)
    c1_wr, _ = _linear(keys[1], 4, HIDDEN)
    c2_wl, c2_b = _linear(keys[2], HIDDEN, HIDDEN)
    c2_wr, _ = _linear(keys[3], HIDDEN, HIDDEN)
    c3_wl, c3_b = _linear(keys[4], HIDDEN, HIDDEN)
    c3_wr, _ = _linear(keys[5], HIDDEN, HIDDEN)
    # head linears
    wi, bi = _linear(keys[6], HIDDEN, 6)
    w1, b1 = _linear(keys[7], 9, 512)
    w2, b2 = _linear(keys[8], 512, 128)
    w3, b3 = _linear(keys[9], 128, 64)
    wo, bo = _linear(keys[10], 64, 5)

    # fold eval-mode BatchNorms into the preceding linears
    s1, t1 = _bn_fold(512); w1, b1 = w1 * s1, b1 * s1 + t1
    s2, t2 = _bn_fold(128); w2, b2 = w2 * s2, b2 * s2 + t2
    s3, t3 = _bn_fold(64);  w3, b3 = w3 * s3, b3 * s3 + t3

    slab_a = _pack(_LAYOUT_A, _ROWS_A, 128, {
        "c1_wl": (c1_wl, 0), "c1_wr": (c1_wr, 0), "c1_b": (c1_b, 0),
        "c2_wl": (c2_wl, 0), "c2_wr": (c2_wr, 0), "c2_b": (c2_b, 0),
        "c3_wl": (c3_wl, 0), "c3_wr": (c3_wr, 0), "c3_b": (c3_b, 0),
        "wi": (wi, 0), "bi": (bi, 0),                 # importance -> lanes 0..5
        "w2": (w2, 0), "b2": (b2, 0),
        "w3": (w3, 0), "b3": (b3, 0),
        "wo": (wo, 6), "bo": (bo, 6),                 # label      -> lanes 6..10
    })
    slab_b = _pack(_LAYOUT_B, _ROWS_B, 512, {
        "w1_im": (w1[:6, :], 0),                      # rows split so cat([|im|,goal])
        "w1_goal": (w1[6:, :], 0),                    # never materializes
        "b1": (b1, 0),
    })
    # TODO(synk): self.lin = Linear(6, 3) is unused in forward; not materialized.
    return {"slab_a": slab_a, "slab_b": slab_b}


# ----------------------------------------------------------------------------
# Full forward pass: ONE fused Pallas call (6 input DMAs total).
# ----------------------------------------------------------------------------
def gnn_forward(params, x, edge_index, batch, goal):
    n = x.shape[0]
    e = edge_index.shape[1]
    num_graphs = goal.shape[0]

    x = x.astype(jnp.float32)
    goal = goal.astype(jnp.float32)
    ei = edge_index.astype(jnp.int32)                       # [2, E]
    batch2d = batch.astype(jnp.int32).reshape(1, n)         # [1, N]

    kernel = functools.partial(gnn_fused_kernel, n=n, num_graphs=num_graphs,
                               layout_a=_LAYOUT_A, layout_b=_LAYOUT_B)

    b = num_graphs
    flops = 2 * (n * e * n
                 + 3 * (n * n * 128 + 2 * n * 128 * 128)
                 + b * n * 128 + b * 128 * 128
                 + b * (128 * 512 + 3 * 512)
                 + b * 512 * 128 + b * 128 * 128 + b * 128 * 128)
    bytes_accessed = 4 * (x.size + ei.size + batch2d.size + goal.size
                          + params["slab_a"].size + params["slab_b"].size
                          + b * 128)

    out = pl.pallas_call(
        kernel,
        out_shape=jax.ShapeDtypeStruct((num_graphs, 128), jnp.float32),
        in_specs=_vmem_specs(6),
        out_specs=pl.BlockSpec(memory_space=pltpu.MemorySpace.VMEM),
        compiler_params=pltpu.CompilerParams(vmem_limit_bytes=4 * 1024 * 1024),
        cost_estimate=pl.CostEstimate(flops=int(flops),
                                      transcendentals=int(b),
                                      bytes_accessed=int(bytes_accessed)),
    )(x, ei, batch2d, goal, params["slab_a"], params["slab_b"])

    im = out[:, 0:6]
    label = out[:, 6:11]
    return im, label


if __name__ == "__main__":
    # Inputs matching the reference script's constants.
    x = jnp.array([[-0.175, -0.65, 0.2, 0.0],
                   [-0.576, -0.5087095, 0.2, 1.0],
                   [-0.175, -0.6261, 0.2, 0.0],
                   [-0.1756, -0.5, 0.2, 1.0],
                   [-0.06, -0.65, 0.2, 0.0]], dtype=jnp.float32)          # [5, 4]
    edge_index = jnp.array([[0, 1, 2, 3],
                            [1, 2, 3, 4]], dtype=jnp.int32)               # [2, 4]
    batch = jnp.zeros((x.shape[0],), dtype=jnp.int32)                     # [5]
    goal = jax.random.normal(jax.random.PRNGKey(0), (1, 3), jnp.float32)  # [1, 3]

    params = make_params(seed=12345)

    im, label = jax.jit(gnn_forward)(params, x, edge_index, batch, goal)
    jax.block_until_ready((im, label))

    assert im.shape == (1, 6) and label.shape == (1, 5)
    assert bool(jnp.all(jnp.isfinite(im))) and bool(jnp.all(jnp.isfinite(label)))
    print("KERNEL_OK")
</pallas_src>

<mosaic_0001>
module attributes {stable_mosaic.version = 11 : i64} {
  func.func @gnn_fused_kernel(%arg0: memref<5x4xf32, #tpu.memory_space<vmem>>, %arg1: memref<2x4xi32, #tpu.memory_space<vmem>>, %arg2: memref<1x5xi32, #tpu.memory_space<vmem>>, %arg3: memref<1x3xf32, #tpu.memory_space<vmem>>, %arg4: memref<1480x128xf32, #tpu.memory_space<vmem>>, %arg5: memref<144x512xf32, #tpu.memory_space<vmem>>, %arg6: memref<1x128xf32, #tpu.memory_space<vmem>>) attributes {dimension_semantics = [], scalar_prefetch = 0 : i64, scratch_operands = 0 : i64, tpu.core_type = #tpu.core_type<tc>} {
    %0 = tpu.iota {dimensions = array<i32: 0>} : vector<5x1xi32>
    %c0 = arith.constant 0 : index
    %c0_0 = arith.constant 0 : index
    %1 = vector.load %arg1[%c0, %c0_0] : memref<2x4xi32, #tpu.memory_space<vmem>>, vector<1x4xi32>
    %2 = vector.broadcast %1 : vector<1x4xi32> to vector<5x4xi32>
    %3 = vector.broadcast %0 : vector<5x1xi32> to vector<5x4xi32>
    %4 = arith.cmpi eq, %2, %3 : vector<5x4xi32>
    %5 = arith.extui %4 : vector<5x4xi1> to vector<5x4xi32>
    %6 = arith.sitofp %5 : vector<5x4xi32> to vector<5x4xf32>
    %c1 = arith.constant 1 : index
    %c0_1 = arith.constant 0 : index
    %7 = vector.load %arg1[%c1, %c0_1] : memref<2x4xi32, #tpu.memory_space<vmem>>, vector<1x4xi32>
    %8 = vector.broadcast %7 : vector<1x4xi32> to vector<5x4xi32>
    %9 = vector.broadcast %0 : vector<5x1xi32> to vector<5x4xi32>
    %10 = arith.cmpi eq, %8, %9 : vector<5x4xi32>
    %11 = arith.extui %10 : vector<5x4xi1> to vector<5x4xi32>
    %12 = arith.sitofp %11 : vector<5x4xi32> to vector<5x4xf32>
    %cst = arith.constant dense<0.000000e+00> : vector<5x5xf32>
    %13 = tpu.matmul %12, %6, %cst {dimension_numbers = #tpu.dot_dimension_numbers<[1], [1], [0], [0], [0, 0, 1, 0], [], []>} : vector<5x4xf32>, vector<5x4xf32>, vector<5x5xf32> -> vector<5x5xf32>
    %cst_2 = arith.constant dense<0.000000e+00> : vector<5xf32>
    %14 = vector.multi_reduction <add>, %13, %cst_2 [1] : vector<5x5xf32> to vector<5xf32>
    %15 = vector.shape_cast %14 : vector<5xf32> to vector<5x1xf32>
    %cst_3 = arith.constant 1.000000e+00 : f32
    %16 = vector.broadcast %cst_3 : f32 to vector<5x1xf32>
    %17 = arith.maximumf %15, %16 : vector<5x1xf32>
    %18 = vector.broadcast %17 : vector<5x1xf32> to vector<5x5xf32>
    %19 = arith.divf %13, %18 : vector<5x5xf32>
    %20 = tpu.iota {dimensions = array<i32: 0>} : vector<1x1xi32>
    %c0_4 = arith.constant 0 : index
    %c0_5 = arith.constant 0 : index
    %21 = vector.load %arg2[%c0_4, %c0_5] : memref<1x5xi32, #tpu.memory_space<vmem>>, vector<1x5xi32>
    %22 = vector.broadcast %20 : vector<1x1xi32> to vector<1x5xi32>
    %23 = arith.cmpi eq, %21, %22 : vector<1x5xi32>
    %24 = arith.extui %23 : vector<1x5xi1> to vector<1x5xi32>
    %25 = arith.sitofp %24 : vector<1x5xi32> to vector<1x5xf32>
    %cst_6 = arith.constant dense<0.000000e+00> : vector<1xf32>
    %26 = vector.multi_reduction <add>, %25, %cst_6 [1] : vector<1x5xf32> to vector<1xf32>
    %27 = vector.shape_cast %26 : vector<1xf32> to vector<1x1xf32>
    %cst_7 = arith.constant 1.000000e+00 : f32
    %28 = vector.broadcast %cst_7 : f32 to vector<1x1xf32>
    %29 = arith.maximumf %27, %28 : vector<1x1xf32>
    %30 = vector.broadcast %29 : vector<1x1xf32> to vector<1x5xf32>
    %31 = arith.divf %25, %30 : vector<1x5xf32>
    %c0_8 = arith.constant 0 : index
    %c0_9 = arith.constant 0 : index
    %32 = vector.load %arg0[%c0_8, %c0_9] : memref<5x4xf32, #tpu.memory_space<vmem>>, vector<5x4xf32>
    %c0_10 = arith.constant 0 : index
    %c0_11 = arith.constant 0 : index
    %33 = vector.load %arg4[%c0_10, %c0_11] : memref<1480x128xf32, #tpu.memory_space<vmem>>, vector<4x128xf32>
    %c8 = arith.constant 8 : index
    %c0_12 = arith.constant 0 : index
    %34 = vector.load %arg4[%c8, %c0_12] : memref<1480x128xf32, #tpu.memory_space<vmem>>, vector<4x128xf32>
    %c16 = arith.constant 16 : index
    %c0_13 = arith.constant 0 : index
    %35 = vector.load %arg4[%c16, %c0_13] : memref<1480x128xf32, #tpu.memory_space<vmem>>, vector<1x128xf32>
    %cst_14 = arith.constant dense<0.000000e+00> : vector<5x4xf32>
    %36 = tpu.matmul %19, %32, %cst_14 {dimension_numbers = #tpu.dot_dimension_numbers<[1], [0], [0], [1], [0, 0, 1, 1], [], []>} : vector<5x5xf32>, vector<5x4xf32>, vector<5x4xf32> -> vector<5x4xf32>
    %cst_15 = arith.constant dense<0.000000e+00> : vector<5x128xf32>
    %37 = tpu.matmul %36, %33, %cst_15 {dimension_numbers = #tpu.dot_dimension_numbers<[1], [0], [0], [1], [0, 0, 1, 1], [], []>} : vector<5x4xf32>, vector<4x128xf32>, vector<5x128xf32> -> vector<5x128xf32>
    %cst_16 = arith.constant dense<0.000000e+00> : vector<5x128xf32>
    %38 = tpu.matmul %32, %34, %cst_16 {dimension_numbers = #tpu.dot_dimension_numbers<[1], [0], [0], [1], [0, 0, 1, 1], [], []>} : vector<5x4xf32>, vector<4x128xf32>, vector<5x128xf32> -> vector<5x128xf32>
    %39 = arith.addf %37, %38 : vector<5x128xf32>
    %40 = vector.broadcast %35 : vector<1x128xf32> to vector<5x128xf32>
    %41 = arith.addf %39, %40 : vector<5x128xf32>
    %cst_17 = arith.constant 0.000000e+00 : f32
    %42 = vector.broadcast %cst_17 : f32 to vector<5x128xf32>
    %43 = arith.maximumf %41, %42 : vector<5x128xf32>
    %c24 = arith.constant 24 : index
    %c0_18 = arith.constant 0 : index
    %44 = vector.load %arg4[%c24, %c0_18] : memref<1480x128xf32, #tpu.memory_space<vmem>>, vector<128x128xf32>
    %c152 = arith.constant 152 : index
    %c0_19 = arith.constant 0 : index
    %45 = vector.load %arg4[%c152, %c0_19] : memref<1480x128xf32, #tpu.memory_space<vmem>>, vector<128x128xf32>
    %c280 = arith.constant 280 : index
    %c0_20 = arith.constant 0 : index
    %46 = vector.load %arg4[%c280, %c0_20] : memref<1480x128xf32, #tpu.memory_space<vmem>>, vector<1x128xf32>
    %cst_21 = arith.constant dense<0.000000e+00> : vector<5x128xf32>
    %47 = tpu.matmul %19, %43, %cst_21 {dimension_numbers = #tpu.dot_dimension_numbers<[1], [0], [0], [1], [0, 0, 1, 1], [], []>} : vector<5x5xf32>, vector<5x128xf32>, vector<5x128xf32> -> vector<5x128xf32>
    %cst_22 = arith.constant dense<0.000000e+00> : vector<5x128xf32>
    %48 = tpu.matmul %47, %44, %cst_22 {dimension_numbers = #tpu.dot_dimension_numbers<[1], [0], [0], [1], [0, 0, 1, 1], [], []>} : vector<5x128xf32>, vector<128x128xf32>, vector<5x128xf32> -> vector<5x128xf32>
    %cst_23 = arith.constant dense<0.000000e+00> : vector<5x128xf32>
    %49 = tpu.matmul %43, %45, %cst_23 {dimension_numbers = #tpu.dot_dimension_numbers<[1], [0], [0], [1], [0, 0, 1, 1], [], []>} : vector<5x128xf32>, vector<128x128xf32>, vector<5x128xf32> -> vector<5x128xf32>
    %50 = arith.addf %48, %49 : vector<5x128xf32>
    %51 = vector.broadcast %46 : vector<1x128xf32> to vector<5x128xf32>
    %52 = arith.addf %50, %51 : vector<5x128xf32>
    %cst_24 = arith.constant 0.000000e+00 : f32
    %53 = vector.broadcast %cst_24 : f32 to vector<5x128xf32>
    %54 = arith.maximumf %52, %53 : vector<5x128xf32>
    %c288 = arith.constant 288 : index
    %c0_25 = arith.constant 0 : index
    %55 = vector.load %arg4[%c288, %c0_25] : memref<1480x128xf32, #tpu.memory_space<vmem>>, vector<128x128xf32>
    %c416 = arith.constant 416 : index
    %c0_26 = arith.constant 0 : index
    %56 = vector.load %arg4[%c416, %c0_26] : memref<1480x128xf32, #tpu.memory_space<vmem>>, vector<128x128xf32>
    %c544 = arith.constant 544 : index
    %c0_27 = arith.constant 0 : index
    %57 = vector.load %arg4[%c544, %c0_27] : memref<1480x128xf32, #tpu.memory_space<vmem>>, vector<1x128xf32>
    %cst_28 = arith.constant dense<0.000000e+00> : vector<5x128xf32>
    %58 = tpu.matmul %19, %54, %cst_28 {dimension_numbers = #tpu.dot_dimension_numbers<[1], [0], [0], [1], [0, 0, 1, 1], [], []>} : vector<5x5xf32>, vector<5x128xf32>, vector<5x128xf32> -> vector<5x128xf32>
    %cst_29 = arith.constant dense<0.000000e+00> : vector<5x128xf32>
    %59 = tpu.matmul %58, %55, %cst_29 {dimension_numbers = #tpu.dot_dimension_numbers<[1], [0], [0], [1], [0, 0, 1, 1], [], []>} : vector<5x128xf32>, vector<128x128xf32>, vector<5x128xf32> -> vector<5x128xf32>
    %cst_30 = arith.constant dense<0.000000e+00> : vector<5x128xf32>
    %60 = tpu.matmul %54, %56, %cst_30 {dimension_numbers = #tpu.dot_dimension_numbers<[1], [0], [0], [1], [0, 0, 1, 1], [], []>} : vector<5x128xf32>, vector<128x128xf32>, vector<5x128xf32> -> vector<5x128xf32>
    %61 = arith.addf %59, %60 : vector<5x128xf32>
    %62 = vector.broadcast %57 : vector<1x128xf32> to vector<5x128xf32>
    %63 = arith.addf %61, %62 : vector<5x128xf32>
    %cst_31 = arith.constant dense<0.000000e+00> : vector<1x128xf32>
    %64 = tpu.matmul %31, %63, %cst_31 {dimension_numbers = #tpu.dot_dimension_numbers<[1], [0], [0], [1], [0, 0, 1, 1], [], []>} : vector<1x5xf32>, vector<5x128xf32>, vector<1x128xf32> -> vector<1x128xf32>
    %c552 = arith.constant 552 : index
    %c0_32 = arith.constant 0 : index
    %65 = vector.load %arg4[%c552, %c0_32] : memref<1480x128xf32, #tpu.memory_space<vmem>>, vector<128x128xf32>
    %cst_33 = arith.constant dense<0.000000e+00> : vector<1x128xf32>
    %66 = tpu.matmul %64, %65, %cst_33 {dimension_numbers = #tpu.dot_dimension_numbers<[1], [0], [0], [1], [0, 0, 1, 1], [], []>} : vector<1x128xf32>, vector<128x128xf32>, vector<1x128xf32> -> vector<1x128xf32>
    %c680 = arith.constant 680 : index
    %c0_34 = arith.constant 0 : index
    %67 = vector.load %arg4[%c680, %c0_34] : memref<1480x128xf32, #tpu.memory_space<vmem>>, vector<1x128xf32>
    %68 = arith.addf %66, %67 : vector<1x128xf32>
    %69 = arith.mulf %68, %68 : vector<1x128xf32>
    %cst_35 = arith.constant dense<0.000000e+00> : vector<1xf32>
    %70 = vector.multi_reduction <add>, %69, %cst_35 [1] : vector<1x128xf32> to vector<1xf32>
    %71 = vector.shape_cast %70 : vector<1xf32> to vector<1x1xf32>
    %cst_36 = arith.constant 1.000000e-24 : f32
    %72 = vector.broadcast %cst_36 : f32 to vector<1x1xf32>
    %73 = arith.maximumf %71, %72 : vector<1x1xf32>
    %74 = math.rsqrt %73 : vector<1x1xf32>
    %75 = vector.broadcast %74 : vector<1x1xf32> to vector<1x128xf32>
    %76 = arith.mulf %68, %75 : vector<1x128xf32>
    %77 = math.absf %76 : vector<1x128xf32>
    %c0_37 = arith.constant 0 : index
    %c0_38 = arith.constant 0 : index
    %78 = vector.load %arg5[%c0_37, %c0_38] : memref<144x512xf32, #tpu.memory_space<vmem>>, vector<128x512xf32>
    %cst_39 = arith.constant dense<0.000000e+00> : vector<1x512xf32>
    %79 = tpu.matmul %77, %78, %cst_39 {dimension_numbers = #tpu.dot_dimension_numbers<[1], [0], [0], [1], [0, 0, 1, 1], [], []>} : vector<1x128xf32>, vector<128x512xf32>, vector<1x512xf32> -> vector<1x512xf32>
    %c0_40 = arith.constant 0 : index
    %c0_41 = arith.constant 0 : index
    %80 = vector.load %arg3[%c0_40, %c0_41] : memref<1x3xf32, #tpu.memory_space<vmem>>, vector<1x3xf32>
    %c128 = arith.constant 128 : index
    %c0_42 = arith.constant 0 : index
    %81 = vector.load %arg5[%c128, %c0_42] : memref<144x512xf32, #tpu.memory_space<vmem>>, vector<3x512xf32>
    %cst_43 = arith.constant dense<0.000000e+00> : vector<1x512xf32>
    %82 = tpu.matmul %80, %81, %cst_43 {dimension_numbers = #tpu.dot_dimension_numbers<[1], [0], [0], [1], [0, 0, 1, 1], [], []>} : vector<1x3xf32>, vector<3x512xf32>, vector<1x512xf32> -> vector<1x512xf32>
    %83 = arith.addf %79, %82 : vector<1x512xf32>
    %c136 = arith.constant 136 : index
    %c0_44 = arith.constant 0 : index
    %84 = vector.load %arg5[%c136, %c0_44] : memref<144x512xf32, #tpu.memory_space<vmem>>, vector<1x512xf32>
    %85 = arith.addf %83, %84 : vector<1x512xf32>
    %cst_45 = arith.constant 0.000000e+00 : f32
    %86 = vector.broadcast %cst_45 : f32 to vector<1x512xf32>
    %87 = arith.maximumf %85, %86 : vector<1x512xf32>
    %c688 = arith.constant 688 : index
    %c0_46 = arith.constant 0 : index
    %88 = vector.load %arg4[%c688, %c0_46] : memref<1480x128xf32, #tpu.memory_space<vmem>>, vector<512x128xf32>
    %cst_47 = arith.constant dense<0.000000e+00> : vector<1x128xf32>
    %89 = tpu.matmul %87, %88, %cst_47 {dimension_numbers = #tpu.dot_dimension_numbers<[1], [0], [0], [1], [0, 0, 1, 1], [], []>} : vector<1x512xf32>, vector<512x128xf32>, vector<1x128xf32> -> vector<1x128xf32>
    %c1200 = arith.constant 1200 : index
    %c0_48 = arith.constant 0 : index
    %90 = vector.load %arg4[%c1200, %c0_48] : memref<1480x128xf32, #tpu.memory_space<vmem>>, vector<1x128xf32>
    %91 = arith.addf %89, %90 : vector<1x128xf32>
    %cst_49 = arith.constant 0.000000e+00 : f32
    %92 = vector.broadcast %cst_49 : f32 to vector<1x128xf32>
    %93 = arith.maximumf %91, %92 : vector<1x128xf32>
    %c1208 = arith.constant 1208 : index
    %c0_50 = arith.constant 0 : index
    %94 = vector.load %arg4[%c1208, %c0_50] : memref<1480x128xf32, #tpu.memory_space<vmem>>, vector<128x128xf32>
    %cst_51 = arith.constant dense<0.000000e+00> : vector<1x128xf32>
    %95 = tpu.matmul %93, %94, %cst_51 {dimension_numbers = #tpu.dot_dimension_numbers<[1], [0], [0], [1], [0, 0, 1, 1], [], []>} : vector<1x128xf32>, vector<128x128xf32>, vector<1x128xf32> -> vector<1x128xf32>
    %c1336 = arith.constant 1336 : index
    %c0_52 = arith.constant 0 : index
    %96 = vector.load %arg4[%c1336, %c0_52] : memref<1480x128xf32, #tpu.memory_space<vmem>>, vector<1x128xf32>
    %97 = arith.addf %95, %96 : vector<1x128xf32>
    %cst_53 = arith.constant 0.000000e+00 : f32
    %98 = vector.broadcast %cst_53 : f32 to vector<1x128xf32>
    %99 = arith.maximumf %97, %98 : vector<1x128xf32>
    %c1344 = arith.constant 1344 : index
    %c0_54 = arith.constant 0 : index
    %100 = vector.load %arg4[%c1344, %c0_54] : memref<1480x128xf32, #tpu.memory_space<vmem>>, vector<128x128xf32>
    %cst_55 = arith.constant dense<0.000000e+00> : vector<1x128xf32>
    %101 = tpu.matmul %99, %100, %cst_55 {dimension_numbers = #tpu.dot_dimension_numbers<[1], [0], [0], [1], [0, 0, 1, 1], [], []>} : vector<1x128xf32>, vector<128x128xf32>, vector<1x128xf32> -> vector<1x128xf32>
    %c1472 = arith.constant 1472 : index
    %c0_56 = arith.constant 0 : index
    %102 = vector.load %arg4[%c1472, %c0_56] : memref<1480x128xf32, #tpu.memory_space<vmem>>, vector<1x128xf32>
    %103 = arith.addf %101, %102 : vector<1x128xf32>
    %104 = arith.addf %76, %103 : vector<1x128xf32>
    %c0_57 = arith.constant 0 : index
    %c0_58 = arith.constant 0 : index
    %105 = vector.load %arg6[%c0_57, %c0_58] : memref<1x128xf32, #tpu.memory_space<vmem>>, vector<1x128xf32>
    tpu.vector_store %arg6[%c0_57, %c0_58], %104 {strides = array<i32>} : memref<1x128xf32, #tpu.memory_space<vmem>>, vector<1x128xf32>,
    return
  }
}

</mosaic_0001>

<bundles_post_ra>
// kernel: gnn_forward.1
= control target key start
LH: loop header
LB: loop body
LE: loop exit
PB: predicated region body
PF: predicated region fallthrough
CT: control target
= control target key end

     0   :  { %11 = vsyncpa [#allocation3], 0  ;;  %s2974_s0 = inlined_call_operand.vmem [shape: f32[5,4], index: 0, kind: input, shape index: {}]   ;;  %s2975_s1 = inlined_call_operand.vmem [shape: s32[2,4], index: 1, kind: input, shape index: {}]   ;;  %s2976_s2 = inlined_call_operand.vmem [shape: s32[1,5], index: 2, kind: input, shape index: {}]   ;;  %s2977_s3 = inlined_call_operand.vmem [shape: f32[1,3], index: 3, kind: input, shape index: {}]   ;;  %s2978_s4 = inlined_call_operand.hbm [shape: f32[1480,128], index: 4, kind: input, shape index: {}]   ;;  %s2979_s5 = inlined_call_operand.hbm [shape: f32[144,512], index: 5, kind: input, shape index: {}]   ;;  %s2980_s6 = inlined_call_operand.vmem [shape: f32[1,128], index: 6, kind: output, shape index: {}]  }
   0x1   :  { %12 = vsyncpa [#allocation5], 0  ;;  %s2743_s21 = smov [#allocation2]   ;;  %s2695_s25 = scalar_lea.hbm %s2978_s4, 23680 }
   0x2   :  { %s26_s22 = sshll.u32 %s2743_s21, 4  ;;  %p2696_p0 = scmp.ne.s32.totalorder %s2978_s4, %s2695_s25  ;;  %s27_s22 = int_to_ptr.vmem [resolvable:$true] %s26_s22 }
   0x3   :  { %p2699_p1 = scmp.lt.u32.totalorder %s2695_s25, %s2978_s4 }
   0x5   :  { %p2701_p2 = pnand %p2699_p1, %p2696_p0 }
   0x7   :  { %2704 = shalt.err (!%p2701_p2)
}
   0x8   :  { %s2705_s30 = scalar_lea.vmem %s27_s22, 23680  ;;  %p2710_p4 = scmp.lt.s32.totalorder %s27_s22, %s27_s22 }
   0x9   :  { %p2706_p3 = scmp.ne.s32.totalorder %s27_s22, %s2705_s30  ;;  %p2711_p5 = scmp.lt.s32.totalorder %s2705_s30, %s2705_s30 }
   0xb   :  { %p2712_p6 = por %p2711_p5, %p2710_p4 }
   0xd   :  { %p2713_p7 = pnand %p2712_p6, %p2706_p3 }
   0xf   :  { %2716 = shalt.err (!%p2713_p7)
}
  0x10   :  { %s2744_s7 = smov 128   ;;  %s2745_s8 = smov 8  }
  0x11   :  { %32 = dma.hbm_to_vmem [thread:$0]  %s2978_s4, 23680, %s27_s22, [#allocation3], %s2744_s7, %s2744_s7, %s2745_s8  }
  0x12   :  { %s2746_s11 = smov [#allocation4]   ;;  %s2717_s15 = scalar_lea.hbm %s2979_s5, 9216 }
  0x13   :  { %s38_s12 = sshll.u32 %s2746_s11, 4  ;;  %p2718_p8 = scmp.ne.s32.totalorder %s2979_s5, %s2717_s15  ;;  %s39_s12 = int_to_ptr.vmem [resolvable:$true] %s38_s12 }
  0x14   :  { %p2721_p9 = scmp.lt.u32.totalorder %s2717_s15, %s2979_s5 }
  0x16   :  { %p2723_p10 = pnand %p2721_p9, %p2718_p8 }
  0x18   :  { %2726 = shalt.err (!%p2723_p10)
}
  0x19   :  { %s2727_s20 = scalar_lea.vmem %s39_s12, 9216  ;;  %p2732_p12 = scmp.lt.s32.totalorder %s39_s12, %s39_s12 }
  0x1a   :  { %p2728_p11 = scmp.ne.s32.totalorder %s39_s12, %s2727_s20  ;;  %p2733_p13 = scmp.lt.s32.totalorder %s2727_s20, %s2727_s20 }
  0x1c   :  { %p2734_p0 = por %p2733_p13, %p2732_p12 }
  0x1e   :  { %p2735_p1 = pnand %p2734_p0, %p2728_p11 }
  0x20   :  { %2738 = shalt.err (!%p2735_p1)
}
  0x21   :  { %s2747_s4 = smov 512   ;;  %s2748_s21 = smov 32  }
  0x22   :  { %44 = dma.hbm_to_vmem [thread:$0]  %s2979_s5, 9216, %s39_s12, [#allocation5], %s2747_s4, %s2747_s4, %s2748_s21  }
  0x23   :  { %2739 = dma.done.wait [#allocation3], 23680  }
  0x24   :  { %2740 = vsyncadd [#allocation3], 4294943616 }
  0x25   :  { %2741 = dma.done.wait [#allocation5], 9216  }
  0x26   :  { %2742 = vsyncadd [#allocation5], 4294958080  ;;  %v51_v0 = vlaneseq  ;;  %v2749_v1 = vmov 0.0   ;;  %vm2750_vm0 = vmmov 0   ;;  %v1869_v3 = vld [vmem:[%s2975_s1] ss:$0 sm:$0xff] }
  0x27   :  { %2100 = vmatprep.subr.mxu1 %v2749_v1  ;;  %2102 = vmatprep.mubr.msk.f32.mxu1 %vm2750_vm0, %v2749_v1  ;;  %vm69_vm1 = vcmask 31744   ;;  %v1871_v4 = vld [vmem:[%s2975_s1 + $0x1] ss:$0 sm:$0xff]  ;;  %vm146_vm4 = vcmask 36864   ;;  %vm172_vm5 = vcmask 1044480   ;;  %vm168_vm6 = vcmask 39936  }
  0x28   :  { %2115 = vmatprep.subr.mxu0 %v2749_v1  ;;  %2117 = vmatprep.mubr.msk.f32.mxu0 %vm2750_vm0, %v2749_v1  ;;  %v2817_v2 = vshrl.u32 %v51_v0, 7  ;;  %v164_v10 = vld [vmem:[%s2974_s0] sm:$0x1f]  ;;  %v166_v15 = vld [vmem:[#allocation2 + $0x8] sm:$0xf]  ;;  %vm248_vm7 = vcmask 1043456  }
  0x29   :  { %v165_v16 = vld [vmem:[#allocation2] sm:$0xf]  ;;  %v2751_v17 = vmov 0.0|0.0   ;;  %v420_v18 = vld [vmem:[#allocation2 + $0x98] sm:$0xff]  ;;  %v422_v21 = vld [vmem:[#allocation2 + $0xa8] sm:$0xff]  ;;  %vm157_vm8 = vcmask 32768  }
  0x2a   :  { %vm58_vm2 = vcmp.eq.s32.totalorder %v1869_v3, %v2817_v2  ;;  %vm66_vm3 = vcmp.eq.s32.totalorder %v1871_v4, %v2817_v2  ;;  %2116 = vmatpush3.msk.msra.mxu0 %vm248_vm7, %v165_v16  ;;  %v421_v19 = vld [vmem:[#allocation2 + $0xa0] sm:$0xff]  ;;  %v423_v22 = vld [vmem:[#allocation2 + $0xb0] sm:$0xff]  ;;  %v424_v26 = vld [vmem:[#allocation2 + $0xb8] sm:$0xff]  ;;  %vm1152_vm10 = vcmask 1042432   ;;  %vm1148_vm11 = vcmask 23552  }
  0x2b   :  { %v1870_v5 = vsel %vm58_vm2, 1.0, %v2749_v1  ;;  %v1872_v6 = vsel %vm66_vm3, 1.0, %v2749_v1  ;;  %2380 = vmatprep.subr.bf16.mxu0 %v2751_v17  ;;  %v2381_v20 = vpack.c.bf16 %v421_v19, %v420_v18  ;;  %v2384_v25 = vpack.c.bf16 %v423_v22, %v422_v21  ;;  %v425_v27 = vld [vmem:[#allocation2 + $0xc0] sm:$0xff]  ;;  %v426_v31 = vld [vmem:[#allocation2 + $0xc8] sm:$0xff]  ;;  %v427_v32 = vld [vmem:[#allocation2 + $0xd0] sm:$0xff] }
  0x2c   :  { %2101 = vmatpush3.xpose.msk.msra.mxu1 %vm69_vm1, %v1870_v5  ;;  %v2387_v30 = vpack.c.bf16 %v425_v27, %v424_v26  ;;  %v2390_v33 = vpack.c.bf16 %v427_v32, %v426_v31  ;;  %v428_v34 = vld [vmem:[#allocation2 + $0xd8] sm:$0xff]  ;;  %v429_v35 = vld [vmem:[#allocation2 + $0xe0] sm:$0xff]  ;;  %v430_v37 = vld [vmem:[#allocation2 + $0xe8] sm:$0xff]  ;;  %vm1071_vm12 = vcmask 1040384  }
  0x2d   :  { %2105 = vmatprep.subr.mxu1 %v2749_v1  ;;  %v2393_v36 = vpack.c.bf16 %v429_v35, %v428_v34  ;;  %v431_v38 = vld [vmem:[#allocation2 + $0xf0] sm:$0xff]  ;;  %v432_v40 = vld [vmem:[#allocation2 + $0xf8] sm:$0xff]  ;;  %v433_v41 = vld [vmem:[#allocation2 + $0x100] sm:$0xff] }
  0x2e   :  { %v2396_v39 = vpack.c.bf16 %v431_v38, %v430_v37  ;;  %v2399_v42 = vpack.c.bf16 %v433_v41, %v432_v40  ;;  %v434_v43 = vld [vmem:[#allocation2 + $0x108] sm:$0xff]  ;;  %v435_v44 = vld [vmem:[#allocation2 + $0x110] sm:$0xff]  ;;  %v404_v50 = vld [vmem:[#allocation2 + $0x18] sm:$0xff] }
  0x2f   :  { %2103 = vmatmul.mubr.msk.f32.vlgmr.msra.gmra.mrb[0].mxu1 %vm69_vm1, %v1872_v6  ;;  %v2402_v45 = vpack.c.bf16 %v435_v44, %v434_v43  ;;  %v1882_v46 = vld [vmem:[#allocation2 + $0x10] ss:$0 sm:$0xff]  ;;  %v405_v51 = vld [vmem:[#allocation2 + $0x20] sm:$0xff]  ;;  %v406_v55 = vld [vmem:[#allocation2 + $0x28] sm:$0xff] }
  0x30   :  { %2107 = vmatprep.mubr.msk.f32.mxu1 %vm2750_vm0, %v2749_v1  ;;  %2106 = vmatpush3.msk.msra.mxu1 %vm172_vm5, %v164_v10  ;;  %v2405_v54 = vpack.c.bf16 %v405_v51, %v404_v50  ;;  %v407_v56 = vld [vmem:[#allocation2 + $0x30] sm:$0xff]  ;;  %v408_v58 = vld [vmem:[#allocation2 + $0x38] sm:$0xff]  ;;  %v409_v59 = vld [vmem:[#allocation2 + $0x40] sm:$0xff] }
  0x31   :  { %2110 = vmatprep.subr.mxu1 %v2749_v1  ;;  %v2408_v57 = vpack.c.bf16 %v407_v56, %v406_v55  ;;  %v2411_v60 = vpack.c.bf16 %v409_v59, %v408_v58  ;;  %v410_v61 = vld [vmem:[#allocation2 + $0x48] sm:$0xff]  ;;  %v411_v62 = vld [vmem:[#allocation2 + $0x50] sm:$0xff]  ;;  %v412_v0 = vld [vmem:[#allocation2 + $0x58] sm:$0xff] }
  0x32   :  { %v2414_v63 = vpack.c.bf16 %v411_v62, %v410_v61  ;;  %v413_v3 = vld [vmem:[#allocation2 + $0x60] sm:$0xff]  ;;  %v414_v5 = vld [vmem:[#allocation2 + $0x68] sm:$0xff]  ;;  %v415_v6 = vld [vmem:[#allocation2 + $0x70] sm:$0xff] }
  0x33   :  { %v2417_v4 = vpack.c.bf16 %v413_v3, %v412_v0  ;;  %v657_v21 = vld [vmem:[#allocation2 + $0x128] sm:$0xff]  ;;  %v658_v22 = vld [vmem:[#allocation2 + $0x130] sm:$0xff]  ;;  %v660_v26 = vld [vmem:[#allocation2 + $0x140] sm:$0xff] }
  0x34   :  { %v661_v27 = vld [vmem:[#allocation2 + $0x148] sm:$0xff]  ;;  %v664_v32 = vld [vmem:[#allocation2 + $0x160] sm:$0xff]  ;;  %v666_v35 = vld [vmem:[#allocation2 + $0x170] sm:$0xff] }
  0x35   :  { %v668_v38 = vld [vmem:[#allocation2 + $0x180] sm:$0xff]  ;;  %v670_v41 = vld [vmem:[#allocation2 + $0x190] sm:$0xff]  ;;  %v1885_v44 = vld [vmem:[#allocation2 + $0x118] ss:$0 sm:$0xff] }
  0x36   :  { %v676_v56 = vld [vmem:[#allocation2 + $0x1c0] sm:$0xff]  ;;  %v678_v59 = vld [vmem:[#allocation2 + $0x1d0] sm:$0xff]  ;;  %v681_v62 = vld [vmem:[#allocation2 + $0x1e8] sm:$0xff] }
  0x37   :  { %v682_v0 = vld [vmem:[#allocation2 + $0x1f0] sm:$0xff]  ;;  %v683_v3 = vld [vmem:[#allocation2 + $0x1f8] sm:$0xff] }
 0x102   :  { %v142_v7 = vpop.f32.mrb[0].mxu1 }
 0x103   :  { %v2104_v8 = vpop.f32.mrb[1].mxu1  ;;  %v147_v9 = vsel %vm146_vm4, %v142_v7, 0.0 }
 0x104   :  { %148 = vadd.xlane.f32.xlu0 %v147_v9  ;;  %v416_v8 = vld [vmem:[#allocation2 + $0x78] sm:$0xff]  ;;  %v417_v9 = vld [vmem:[#allocation2 + $0x80] sm:$0xff] }
 0x191   :  { %v149_v11 = vpop.xlane.xlu0 %148 }
 0x192   :  { %v150_v12 = vmax.f32 %v149_v11, 1.0  ;;  %v418_v11 = vld [vmem:[#allocation2 + $0x88] sm:$0xff] }
 0x194   :  { %2689 = vrcp.f32 %v150_v12  ;;  %v419_v12 = vld [vmem:[#allocation2 + $0x90] sm:$0xff] }
 0x19e   :  { %v2690_v13 = vpop.eup %2689 }
 0x19f   :  { %v2839_v14 = vmul.f32 %v2690_v13, %v142_v7  ;;  %v2420_v7 = vpack.c.bf16 %v415_v6, %v414_v5  ;;  %v2426_v13 = vpack.c.bf16 %v419_v12, %v418_v11  ;;  %v684_v5 = vld [vmem:[#allocation2 + $0x200] sm:$0xff]  ;;  %v685_v6 = vld [vmem:[#allocation2 + $0x208] sm:$0xff] }
 0x1a0   :  { %v153_v11 = vld [vmem:[%s2976_s2] sm:$0x1] }
 0x1a1   :  { %2108 = vmatmul.mubr.msk.f32.vlgmr.msra.gmra.mrb[2].mxu1 %vm168_vm6, %v2839_v14  ;;  %vm154_vm9 = vcmp.eq.s32.totalorder %v153_v11, %v2817_v2 }
 0x1a2   :  { %2111 = vmatpush3.msk.msra.mxu1 %vm248_vm7, %v166_v15  ;;  %2112 = vmatprep.mubr.msk.f32.mxu1 %vm2750_vm0, %v2749_v1  ;;  %v1875_v12 = vsel %vm154_vm9, 1.0, %v2749_v1 }
 0x1a3   :  { %2120 = vmatprep.subr.mxu1 %v2749_v1 }
 0x1a5   :  { %2113 = vmatmul.mubr.msk.f32.vlgmr.msra.gmra.mrb[4].mxu1 %vm69_vm1, %v164_v10  ;;  %v2423_v10 = vpack.c.bf16 %v417_v9, %v416_v8  ;;  %v686_v8 = vld [vmem:[#allocation2 + $0x210] sm:$0xff]  ;;  %v687_v9 = vld [vmem:[#allocation2 + $0x218] sm:$0xff] }
 0x1a6   :  { %2122 = vmatprep.mubr.msk.f32.mxu1 %vm2750_vm0, %v2749_v1 }
 0x274   :  { %v242_v23 = vpop.f32.mrb[2].mxu1 }
 0x275   :  { %v2109_v24 = vpop.f32.mrb[3].mxu1  ;;  %2118 = vmatmul.mubr.msk.f32.vlgmr.msra.gmra.mrb[0].mxu0 %vm69_vm1, %v242_v23 }
 0x276   :  { %2382 = vmatpush3.bf16.msra.mxu0 %v2381_v20  ;;  %2157 = vmatprep.mubr.msk.f32.mxu0 %vm2750_vm0, %v2749_v1  ;;  %v656_v20 = vld [vmem:[#allocation2 + $0x120] sm:$0xff]  ;;  %v659_v24 = vld [vmem:[#allocation2 + $0x138] sm:$0xff] }
 0x277   :  { %2383 = vmatprep.subr.bf16.mxu0 %v2751_v17  ;;  %v2453_v23 = vpack.c.bf16 %v657_v21, %v656_v20  ;;  %v983_v20 = vld [vmem:[#allocation2 + $0x228] sm:$0xff]  ;;  %v984_v21 = vld [vmem:[#allocation2 + $0x230] sm:$0xff] }
 0x278   :  { %v318_v28 = vpop.f32.mrb[4].mxu1 }
 0x279   :  { %v2114_v29 = vpop.f32.mrb[5].mxu1 }
 0x27a   :  { %2385 = vmatpush3.bf16.msra.mxu0 %v2384_v25  ;;  %v2456_v25 = vpack.c.bf16 %v659_v24, %v658_v22  ;;  %v662_v29 = vld [vmem:[#allocation2 + $0x150] sm:$0xff]  ;;  %v985_v22 = vld [vmem:[#allocation2 + $0x238] sm:$0xff]  ;;  %v986_v24 = vld [vmem:[#allocation2 + $0x240] sm:$0xff] }
 0x27b   :  { %2386 = vmatprep.subr.bf16.mxu0 %v2751_v17 }
 0x27e   :  { %2388 = vmatpush3.bf16.msra.mxu0 %v2387_v30  ;;  %v663_v30 = vld [vmem:[#allocation2 + $0x158] sm:$0xff] }
 0x27f   :  { %2389 = vmatprep.subr.bf16.mxu0 %v2751_v17  ;;  %v2462_v31 = vpack.c.bf16 %v663_v30, %v662_v29  ;;  %v989_v29 = vld [vmem:[#allocation2 + $0x258] sm:$0xff]  ;;  %v990_v30 = vld [vmem:[#allocation2 + $0x260] sm:$0xff] }
 0x282   :  { %2391 = vmatpush3.bf16.msra.mxu0 %v2390_v33  ;;  %v665_v33 = vld [vmem:[#allocation2 + $0x168] sm:$0xff] }
 0x283   :  { %2392 = vmatprep.subr.bf16.mxu0 %v2751_v17  ;;  %v2465_v34 = vpack.c.bf16 %v665_v33, %v664_v32  ;;  %v991_v32 = vld [vmem:[#allocation2 + $0x268] sm:$0xff]  ;;  %v992_v33 = vld [vmem:[#allocation2 + $0x270] sm:$0xff] }
 0x286   :  { %2394 = vmatpush3.bf16.msra.mxu0 %v2393_v36  ;;  %v667_v36 = vld [vmem:[#allocation2 + $0x178] sm:$0xff] }
 0x287   :  { %2395 = vmatprep.subr.bf16.mxu0 %v2751_v17  ;;  %v2468_v37 = vpack.c.bf16 %v667_v36, %v666_v35  ;;  %v993_v35 = vld [vmem:[#allocation2 + $0x278] sm:$0xff]  ;;  %v994_v36 = vld [vmem:[#allocation2 + $0x280] sm:$0xff] }
 0x28a   :  { %2397 = vmatpush3.bf16.msra.mxu0 %v2396_v39  ;;  %v669_v39 = vld [vmem:[#allocation2 + $0x188] sm:$0xff] }
 0x28b   :  { %2398 = vmatprep.subr.bf16.mxu0 %v2751_v17  ;;  %v2471_v40 = vpack.c.bf16 %v669_v39, %v668_v38  ;;  %v995_v38 = vld [vmem:[#allocation2 + $0x288] sm:$0xff]  ;;  %v996_v39 = vld [vmem:[#allocation2 + $0x290] sm:$0xff] }
 0x28e   :  { %2400 = vmatpush3.bf16.msra.mxu0 %v2399_v42  ;;  %v671_v42 = vld [vmem:[#allocation2 + $0x198] sm:$0xff] }
 0x28f   :  { %2401 = vmatprep.subr.bf16.mxu0 %v2751_v17  ;;  %v2474_v43 = vpack.c.bf16 %v671_v42, %v670_v41  ;;  %v997_v41 = vld [vmem:[#allocation2 + $0x298] sm:$0xff]  ;;  %v998_v42 = vld [vmem:[#allocation2 + $0x2a0] sm:$0xff] }
 0x292   :  { %2403 = vmatpush3.bf16.msra.mxu0 %v2402_v45 }
 0x293   :  { %2452 = vmatprep.subr.bf16.mxu0 %v2751_v17 }
 0x348   :  { %v394_v47 = vpop.f32.mrb[0].mxu0 }
 0x349   :  { %v395_v48 = vadd.f32 %v394_v47, %v318_v28  ;;  %v2119_v49 = vpop.f32.mrb[1].mxu0  ;;  %v2459_v28 = vpack.c.bf16 %v661_v27, %v660_v26  ;;  %v987_v26 = vld [vmem:[#allocation2 + $0x248] sm:$0xff]  ;;  %v988_v27 = vld [vmem:[#allocation2 + $0x250] sm:$0xff] }
 0x34a   :  { %v673_v49 = vld [vmem:[#allocation2 + $0x1a8] sm:$0xff] }
 0x34b   :  { %v402_v52 = vadd.f32 %v1882_v46, %v395_v48  ;;  %v672_v48 = vld [vmem:[#allocation2 + $0x1a0] sm:$0xff] }
 0x34d   :  { %v403_v53 = vmax.f32 %v402_v52, 0.0  ;;  %v2429_v52 = vpack.c.bf16 %v673_v49, %v672_v48 }
 0x34f   :  { %2121 = vmatpush3.msk.msra.mxu1 %vm172_vm5, %v403_v53  ;;  %2158 = vmatmul.mubr.f32.vlgmr.msra.gmra.mrb[2].mxu0 %v403_v53  ;;  %v674_v53 = vld [vmem:[#allocation2 + $0x1b0] sm:$0xff] }
 0x350   :  { %2123 = vmatmul.mubr.msk.f32.vlgmr.msra.gmra.mrb[6].mxu1 %vm168_vm6, %v2839_v14  ;;  %2404 = vmatprep.subr.bf16.mxu1 %v2751_v17 }
 0x351   :  { %2406 = vmatpush3.bf16.msra.mxu1 %v2405_v54  ;;  %2192 = vmatprep.mubr.msk.f32.mxu1 %vm2750_vm0, %v2749_v1  ;;  %v675_v54 = vld [vmem:[#allocation2 + $0x1b8] sm:$0xff] }
 0x352   :  { %2407 = vmatprep.subr.bf16.mxu1 %v2751_v17  ;;  %2267 = vmatprep.mubr.msk.f32.mxu0 %vm2750_vm0, %v2749_v1  ;;  %v2432_v55 = vpack.c.bf16 %v675_v54, %v674_v53 }
 0x353   :  { %2454 = vmatpush3.bf16.msra.mxu0 %v2453_v23  ;;  %v2477_v23 = vpack.c.bf16 %v984_v21, %v983_v20  ;;  %v1103_v20 = vld [vmem:[#allocation4 + $0xc0] sm:$0xff] }
 0x354   :  { %2455 = vmatprep.subr.bf16.mxu0 %v2751_v17  ;;  %v1107_v21 = vld [vmem:[#allocation4 + $0xe0] sm:$0xff] }
 0x355   :  { %2409 = vmatpush3.bf16.msra.mxu1 %v2408_v57  ;;  %v677_v57 = vld [vmem:[#allocation2 + $0x1c8] sm:$0xff] }
 0x356   :  { %2410 = vmatprep.subr.bf16.mxu1 %v2751_v17  ;;  %v2435_v58 = vpack.c.bf16 %v677_v57, %v676_v56  ;;  %v1144_v56 = vld [vmem:[#allocation4 + $0x200] sm:$0x7]  ;;  %v1143_v57 = vld [vmem:[%s2977_s3] sm:$0x1] }
 0x357   :  { %2457 = vmatpush3.bf16.msra.mxu0 %v2456_v25  ;;  %v2480_v25 = vpack.c.bf16 %v986_v24, %v985_v22  ;;  %v2514_v22 = vpack.c.bf16 %v1107_v21, %v1103_v20 }
 0x358   :  { %2458 = vmatprep.subr.bf16.mxu0 %v2751_v17 }
 0x359   :  { %2412 = vmatpush3.bf16.msra.mxu1 %v2411_v60  ;;  %v679_v60 = vld [vmem:[#allocation2 + $0x1d8] sm:$0xff] }
 0x35a   :  { %2413 = vmatprep.subr.bf16.mxu1 %v2751_v17  ;;  %v2438_v61 = vpack.c.bf16 %v679_v60, %v678_v59  ;;  %v1146_v59 = vld [vmem:[#allocation4 + $0x210] sm:$0x7]  ;;  %v1080_v60 = vld [vmem:[#allocation4 + $0x8] sm:$0xff] }
 0x35b   :  { %2460 = vmatpush3.bf16.msra.mxu0 %v2459_v28  ;;  %v2483_v28 = vpack.c.bf16 %v988_v27, %v987_v26 }
 0x35c   :  { %2461 = vmatprep.subr.bf16.mxu0 %v2751_v17 }
 0x35d   :  { %2415 = vmatpush3.bf16.msra.mxu1 %v2414_v63 }
 0x35e   :  { %2416 = vmatprep.subr.bf16.mxu1 %v2751_v17 }
 0x35f   :  { %2463 = vmatpush3.bf16.msra.mxu0 %v2462_v31  ;;  %v2486_v31 = vpack.c.bf16 %v990_v30, %v989_v29  ;;  %v1112_v29 = vld [vmem:[#allocation4 + $0x108] sm:$0xff] }
 0x360   :  { %2464 = vmatprep.subr.bf16.mxu0 %v2751_v17  ;;  %v1116_v30 = vld [vmem:[#allocation4 + $0x128] sm:$0xff] }
 0x361   :  { %2418 = vmatpush3.bf16.msra.mxu1 %v2417_v4  ;;  %v2444_v4 = vpack.c.bf16 %v683_v3, %v682_v0  ;;  %v1088_v0 = vld [vmem:[#allocation4 + $0x48] sm:$0xff] }
 0x362   :  { %2419 = vmatprep.subr.bf16.mxu1 %v2751_v17  ;;  %v1092_v3 = vld [vmem:[#allocation4 + $0x68] sm:$0xff] }
 0x363   :  { %2466 = vmatpush3.bf16.msra.mxu0 %v2465_v34  ;;  %v2489_v34 = vpack.c.bf16 %v992_v33, %v991_v32  ;;  %v1111_v32 = vld [vmem:[#allocation4 + $0x100] sm:$0xff] }
 0x364   :  { %2467 = vmatprep.subr.bf16.mxu0 %v2751_v17  ;;  %v1115_v33 = vld [vmem:[#allocation4 + $0x120] sm:$0xff] }
 0x365   :  { %2421 = vmatpush3.bf16.msra.mxu1 %v2420_v7  ;;  %v2447_v7 = vpack.c.bf16 %v685_v6, %v684_v5  ;;  %v2504_v5 = vpack.c.bf16 %v1092_v3, %v1088_v0  ;;  %v1087_v6 = vld [vmem:[#allocation4 + $0x40] sm:$0xff]  ;;  %v1482_v0 = vld [vmem:[#allocation2 + $0x2c0] sm:$0xff] }
 0x366   :  { %2422 = vmatprep.subr.bf16.mxu1 %v2751_v17  ;;  %v1483_v3 = vld [vmem:[#allocation2 + $0x2c8] sm:$0xff] }
 0x367   :  { %2469 = vmatpush3.bf16.msra.mxu0 %v2468_v37  ;;  %v2492_v37 = vpack.c.bf16 %v994_v36, %v993_v35  ;;  %v1120_v35 = vld [vmem:[#allocation4 + $0x148] sm:$0xff] }
 0x368   :  { %2470 = vmatprep.subr.bf16.mxu0 %v2751_v17  ;;  %v1124_v36 = vld [vmem:[#allocation4 + $0x168] sm:$0xff] }
 0x369   :  { %2424 = vmatpush3.bf16.msra.mxu1 %v2423_v10  ;;  %v2450_v10 = vpack.c.bf16 %v687_v9, %v686_v8  ;;  %v1096_v8 = vld [vmem:[#allocation4 + $0x88] sm:$0xff] }
 0x36a   :  { %2425 = vmatprep.subr.bf16.mxu1 %v2751_v17  ;;  %v1100_v9 = vld [vmem:[#allocation4 + $0xa8] sm:$0xff] }
 0x36b   :  { %2472 = vmatpush3.bf16.msra.mxu0 %v2471_v40  ;;  %v2495_v40 = vpack.c.bf16 %v996_v39, %v995_v38  ;;  %v2508_v11 = vpack.c.bf16 %v1100_v9, %v1096_v8  ;;  %v1119_v38 = vld [vmem:[#allocation4 + $0x140] sm:$0xff]  ;;  %v1484_v8 = vld [vmem:[#allocation2 + $0x2d0] sm:$0xff]  ;;  %v1485_v9 = vld [vmem:[#allocation2 + $0x2d8] sm:$0xff] }
 0x36c   :  { %2473 = vmatprep.subr.bf16.mxu0 %v2751_v17  ;;  %v1123_v39 = vld [vmem:[#allocation4 + $0x160] sm:$0xff] }
 0x36d   :  { %2427 = vmatpush3.bf16.msra.mxu1 %v2426_v13  ;;  %v158_v13 = vsel %vm157_vm8, %v1875_v12, 0.0 }
 0x36e   :  { %2195 = vmatprep.subr.mxu1 %v2749_v1  ;;  %159 = vadd.xlane.f32.xlu0 %v158_v13  ;;  %v1099_v13 = vld [vmem:[#allocation4 + $0xa0] sm:$0xff] }
 0x36f   :  { %2475 = vmatpush3.bf16.msra.mxu0 %v2474_v43  ;;  %v2498_v43 = vpack.c.bf16 %v998_v42, %v997_v41  ;;  %v2522_v41 = vpack.c.bf16 %v1123_v39, %v1119_v38  ;;  %v1132_v42 = vld [vmem:[#allocation4 + $0x1a8] sm:$0xff] }
 0x370   :  { %2476 = vmatprep.subr.bf16.mxu0 %v2751_v17 }
 0x422   :  { %v576_v15 = vpop.f32.mrb[2].mxu0 }
 0x423   :  { %v506_v16 = vpop.f32.mrb[6].mxu1  ;;  %v2159_v18 = vpop.f32.mrb[3].mxu0 }
 0x424   :  { %v2124_v19 = vpop.f32.mrb[7].mxu1  ;;  %2193 = vmatmul.mubr.f32.vlgmr.msra.gmra.mrb[8].mxu1 %v506_v16 }
 0x425   :  { %2197 = vmatprep.mubr.msk.f32.mxu1 %vm2750_vm0, %v2749_v1 }
 0x4f7   :  { %v646_v45 = vpop.f32.mrb[8].mxu1 }
 0x4f8   :  { %v647_v46 = vadd.f32 %v646_v45, %v576_v15  ;;  %v2194_v47 = vpop.f32.mrb[9].mxu1 }
 0x4f9   :  { %v1888_v47 = vld [vmem:[#allocation2 + $0x220] ss:$0 sm:$0xff] }
 0x4fa   :  { %v654_v50 = vadd.f32 %v1885_v44, %v647_v46  ;;  %v160_v44 = vpop.xlane.xlu0 %159 }
 0x4fb   :  { %v161_v45 = vmax.f32 %v160_v44, 1.0  ;;  %v1131_v44 = vld [vmem:[#allocation4 + $0x1a0] sm:$0xff] }
 0x4fc   :  { %v655_v51 = vmax.f32 %v654_v50, 0.0 }
 0x4fd   :  { %2691 = vrcp.f32 %v161_v45 }
 0x4fe   :  { %2196 = vmatpush3.msk.msra.mxu1 %vm172_vm5, %v655_v51 }
 0x4ff   :  { %2198 = vmatmul.mubr.msk.f32.vlgmr.msra.gmra.mrb[10].mxu1 %vm168_vm6, %v2839_v14  ;;  %2428 = vmatprep.subr.bf16.mxu1 %v2751_v17  ;;  %v680_v14 = vld [vmem:[#allocation2 + $0x1e0] sm:$0xff] }
 0x500   :  { %2430 = vmatpush3.bf16.msra.mxu1 %v2429_v52  ;;  %2232 = vmatprep.mubr.msk.f32.mxu1 %vm2750_vm0, %v2749_v1  ;;  %v2441_v63 = vpack.c.bf16 %v681_v62, %v680_v14  ;;  %v1079_v14 = vld [vmem:[#allocation4] sm:$0xff] }
 0x501   :  { %2431 = vmatprep.subr.bf16.mxu1 %v2751_v17 }
 0x504   :  { %2433 = vmatpush3.bf16.msra.mxu1 %v2432_v55  ;;  %v1145_v55 = vld [vmem:[#allocation4 + $0x208] sm:$0x7] }
 0x505   :  { %2434 = vmatprep.subr.bf16.mxu1 %v2751_v17 }
 0x507   :  { %v2692_v46 = vpop.eup %2691 }
 0x508   :  { %2436 = vmatpush3.bf16.msra.mxu1 %v2435_v58  ;;  %v1147_v58 = vld [vmem:[#allocation4 + $0x218] sm:$0x7] }
 0x509   :  { %2437 = vmatprep.subr.bf16.mxu1 %v2751_v17 }
 0x50c   :  { %2439 = vmatpush3.bf16.msra.mxu1 %v2438_v61  ;;  %v1084_v61 = vld [vmem:[#allocation4 + $0x28] sm:$0xff] }
 0x50d   :  { %2440 = vmatprep.subr.bf16.mxu1 %v2751_v17  ;;  %v2500_v62 = vpack.c.bf16 %v1084_v61, %v1080_v60  ;;  %v1481_v60 = vld [vmem:[#allocation2 + $0x2b8] sm:$0xff]  ;;  %v1498_v61 = vld [vmem:[#allocation2 + $0x340] sm:$0xff] }
 0x510   :  { %2442 = vmatpush3.bf16.msra.mxu1 %v2441_v63  ;;  %v1083_v63 = vld [vmem:[#allocation4 + $0x20] sm:$0xff] }
 0x511   :  { %2443 = vmatprep.subr.bf16.mxu1 %v2751_v17 }
 0x514   :  { %2445 = vmatpush3.bf16.msra.mxu1 %v2444_v4  ;;  %v2502_v4 = vpack.c.bf16 %v1083_v63, %v1079_v14  ;;  %v1499_v14 = vld [vmem:[#allocation2 + $0x348] sm:$0xff] }
 0x515   :  { %2446 = vmatprep.subr.bf16.mxu1 %v2751_v17  ;;  %v2568_v63 = vpack.c.bf16 %v1499_v14, %v1498_v61  ;;  %v1109_v61 = vld [vmem:[#allocation4 + $0xf0] sm:$0xff]  ;;  %v1114_v14 = vld [vmem:[#allocation4 + $0x118] sm:$0xff] }
 0x518   :  { %2448 = vmatpush3.bf16.msra.mxu1 %v2447_v7  ;;  %v1091_v7 = vld [vmem:[#allocation4 + $0x60] sm:$0xff] }
 0x519   :  { %2449 = vmatprep.subr.bf16.mxu1 %v2751_v17 }
 0x51c   :  { %2451 = vmatpush3.bf16.msra.mxu1 %v2450_v10  ;;  %v2506_v10 = vpack.c.bf16 %v1091_v7, %v1087_v6  ;;  %v2570_v6 = vpack.c.bf16 %v1483_v3, %v1482_v0  ;;  %v1113_v3 = vld [vmem:[#allocation4 + $0x110] sm:$0xff] }
 0x51d   :  { %2270 = vmatprep.subr.mxu1 %v2749_v1 }
 0x51f   :  { %2233 = vmatmul.mubr.f32.vlgmr.msra.gmra.mrb[12].mxu1 %v655_v51  ;;  %v163_v51 = vmul.f32 %v2692_v46, %v1875_v12  ;;  %v1095_v12 = vld [vmem:[#allocation4 + $0x80] sm:$0xff]  ;;  %v1136_v46 = vld [vmem:[#allocation4 + $0x1c8] sm:$0xff] }
 0x520   :  { %2272 = vmatprep.mubr.msk.f32.mxu1 %vm2750_vm0, %v2749_v1 }
 0x5d2   :  { %v758_v15 = vpop.f32.mrb[10].mxu1 }
 0x5d3   :  { %v2199_v16 = vpop.f32.mrb[11].mxu1  ;;  %2268 = vmatmul.mubr.f32.vlgmr.msra.gmra.mrb[4].mxu0 %v758_v15  ;;  %v1104_v15 = vld [vmem:[#allocation4 + $0xc8] sm:$0xff] }
 0x5d4   :  { %2307 = vmatprep.mubr.msk.f32.mxu0 %vm2750_vm0, %v2749_v1  ;;  %2478 = vmatpush3.bf16.msra.mxu0 %v2477_v23  ;;  %v1108_v16 = vld [vmem:[#allocation4 + $0xe8] sm:$0xff]  ;;  %v999_v23 = vld [vmem:[#allocation2 + $0x2a8] sm:$0x1] }
 0x5d5   :  { %2479 = vmatprep.subr.bf16.mxu0 %v2751_v17 }
 0x5d8   :  { %2481 = vmatpush3.bf16.msra.mxu0 %v2480_v25 }
 0x5d9   :  { %2482 = vmatprep.subr.bf16.mxu0 %v2751_v17 }
 0x5dc   :  { %2484 = vmatpush3.bf16.msra.mxu0 %v2483_v28 }
 0x5dd   :  { %2485 = vmatprep.subr.bf16.mxu0 %v2751_v17 }
 0x5e0   :  { %2487 = vmatpush3.bf16.msra.mxu0 %v2486_v31  ;;  %v2516_v31 = vpack.c.bf16 %v1116_v30, %v1112_v29  ;;  %v1490_v29 = vld [vmem:[#allocation2 + $0x300] sm:$0xff]  ;;  %v1491_v30 = vld [vmem:[#allocation2 + $0x308] sm:$0xff] }
 0x5e1   :  { %2488 = vmatprep.subr.bf16.mxu0 %v2751_v17 }
 0x5e4   :  { %2490 = vmatpush3.bf16.msra.mxu0 %v2489_v34  ;;  %v2518_v34 = vpack.c.bf16 %v1115_v33, %v1111_v32  ;;  %v1509_v32 = vld [vmem:[#allocation2 + $0x398] sm:$0xff]  ;;  %v2586_v33 = vpack.c.bf16 %v1491_v30, %v1490_v29  ;;  %v1494_v30 = vld [vmem:[#allocation2 + $0x320] sm:$0xff] }
 0x5e5   :  { %2491 = vmatprep.subr.bf16.mxu0 %v2751_v17 }
 0x5e8   :  { %2493 = vmatpush3.bf16.msra.mxu0 %v2492_v37  ;;  %v2520_v37 = vpack.c.bf16 %v1124_v36, %v1120_v35  ;;  %v1492_v35 = vld [vmem:[#allocation2 + $0x310] sm:$0xff]  ;;  %v1493_v36 = vld [vmem:[#allocation2 + $0x318] sm:$0xff] }
 0x5e9   :  { %2494 = vmatprep.subr.bf16.mxu0 %v2751_v17 }
 0x5ec   :  { %2496 = vmatpush3.bf16.msra.mxu0 %v2495_v40  ;;  %v1128_v40 = vld [vmem:[#allocation4 + $0x188] sm:$0xff] }
 0x5ed   :  { %2497 = vmatprep.subr.bf16.mxu0 %v2751_v17  ;;  %v2524_v45 = vpack.c.bf16 %v1132_v42, %v1128_v40  ;;  %v1081_v40 = vld [vmem:[#allocation4 + $0x10] sm:$0xff] }
 0x5f0   :  { %2499 = vmatpush3.bf16.msra.mxu0 %v2498_v43  ;;  %v1127_v43 = vld [vmem:[#allocation4 + $0x180] sm:$0xff] }
 0x5f2   :  { %v828_v18 = vpop.f32.mrb[12].mxu1 }
 0x5f3   :  { %v2234_v19 = vpop.f32.mrb[13].mxu1 }
 0x5f4   :  { %v2512_v19 = vpack.c.bf16 %v1108_v16, %v1104_v15  ;;  %v1486_v15 = vld [vmem:[#allocation2 + $0x2e0] sm:$0xff]  ;;  %v1487_v16 = vld [vmem:[#allocation2 + $0x2e8] sm:$0xff] }
 0x5f5   :  { %v2578_v20 = vpack.c.bf16 %v1487_v16, %v1486_v15  ;;  %v1129_v16 = vld [vmem:[#allocation4 + $0x190] sm:$0xff] }
 0x6a6   :  { %v898_v48 = vpop.f32.mrb[4].mxu0 }
 0x6a7   :  { %v899_v49 = vadd.f32 %v898_v48, %v828_v18  ;;  %v2269_v50 = vpop.f32.mrb[5].mxu0  ;;  %v2510_v18 = vpack.c.bf16 %v1099_v13, %v1095_v12  ;;  %v2526_v48 = vpack.c.bf16 %v1131_v44, %v1127_v43  ;;  %v2574_v12 = vpack.c.bf16 %v1485_v9, %v1484_v8  ;;  %v1090_v43 = vld [vmem:[#allocation4 + $0x58] sm:$0xff]  ;;  %v1121_v9 = vld [vmem:[#allocation4 + $0x150] sm:$0xff] }
 0x6a8   :  { %v1135_v50 = vld [vmem:[#allocation4 + $0x1c0] sm:$0xff]  ;;  %v1094_v44 = vld [vmem:[#allocation4 + $0x78] sm:$0xff] }
 0x6a9   :  { %v906_v52 = vadd.f32 %v1888_v47, %v899_v49  ;;  %v1140_v47 = vld [vmem:[#allocation4 + $0x1e8] sm:$0xff] }
 0x6aa   :  { %v2528_v49 = vpack.c.bf16 %v1140_v47, %v1136_v46 }
 0x6ab   :  { %2271 = vmatpush3.msk.msra.mxu1 %vm172_vm5, %v906_v52  ;;  %v1082_v52 = vld [vmem:[#allocation4 + $0x18] sm:$0xff] }
 0x6ac   :  { %2273 = vmatmul.mubr.msk.f32.vlgmr.msra.gmra.mrb[14].mxu1 %vm168_vm6, %v163_v51  ;;  %1891 = vmatprep.subr.msk.mxu1 %vm1152_vm10, %v1145_v55  ;;  %v1139_v51 = vld [vmem:[#allocation4 + $0x1e0] sm:$0xff] }
 0x6ad   :  { %1229 = vmatprep.mubr.f32.mxu1 %v2749_v1  ;;  %1892 = vmatpush1.msk.msra.mxu1 %vm1152_vm10, %v1144_v56  ;;  %v1496_v56 = vld [vmem:[#allocation2 + $0x330] sm:$0xff] }
 0x6ae   :  { %1894 = vmatprep.subr.msk.mxu1 %vm1152_vm10, %v1147_v58  ;;  %v1480_v58 = vld [vmem:[#allocation2 + $0x2b0] sm:$0xff] }
 0x6b0   :  { %1893 = vmatmul.mubr.msk.f32.vlgmr.msra.gmra.mrb[16].mxu1 %vm1148_vm11, %v1143_v57 }
 0x6b1   :  { %1895 = vmatpush1.msk.msra.mxu1 %vm1152_vm10, %v1146_v59  ;;  %1300 = vmatprep.mubr.f32.mxu1 %v2749_v1 }
 0x6b2   :  { %2501 = vmatprep.subr.bf16.mxu1 %v2500_v62  ;;  %v2566_v62 = vpack.c.bf16 %v1481_v60, %v1480_v58  ;;  %v1105_v60 = vld [vmem:[#allocation4 + $0xd0] sm:$0xff] }
 0x6b4   :  { %1896 = vmatmul.mubr.msk.f32.vlgmr.msra.gmra.mrb[18].mxu1 %vm1148_vm11, %v1143_v57  ;;  %v1497_v57 = vld [vmem:[#allocation2 + $0x338] sm:$0xff] }
 0x6b5   :  { %2503 = vmatpush1.bf16.msra.mxu1 %v2502_v4  ;;  %1371 = vmatprep.mubr.f32.mxu1 %v2749_v1  ;;  %v2564_v59 = vpack.c.bf16 %v1497_v57, %v1496_v56  ;;  %v1500_v4 = vld [vmem:[#allocation2 + $0x350] sm:$0xff]  ;;  %v1101_v56 = vld [vmem:[#allocation4 + $0xb0] sm:$0xff]  ;;  %v1106_v57 = vld [vmem:[#allocation4 + $0xd8] sm:$0xff] }
 0x6b6   :  { %2505 = vmatprep.subr.bf16.mxu1 %v2504_v5  ;;  %v1501_v5 = vld [vmem:[#allocation2 + $0x358] sm:$0xff] }
 0x6b7   :  { %2565 = vmatprep.subr.bf16.mxu0 %v2564_v59  ;;  %v2572_v7 = vpack.c.bf16 %v1501_v5, %v1500_v4  ;;  %v1117_v4 = vld [vmem:[#allocation4 + $0x130] sm:$0xff]  ;;  %v1122_v5 = vld [vmem:[#allocation4 + $0x158] sm:$0xff] }
 0x6b9   :  { %2507 = vmatpush1.bf16.msra.mxu1 %v2506_v10  ;;  %v1502_v10 = vld [vmem:[#allocation2 + $0x360] sm:$0xff] }
 0x6ba   :  { %2509 = vmatprep.subr.bf16.mxu1 %v2508_v11  ;;  %v1503_v11 = vld [vmem:[#allocation2 + $0x368] sm:$0xff] }
 0x6bb   :  { %v2576_v13 = vpack.c.bf16 %v1503_v11, %v1502_v10  ;;  %v1125_v10 = vld [vmem:[#allocation4 + $0x170] sm:$0xff]  ;;  %v1130_v11 = vld [vmem:[#allocation4 + $0x198] sm:$0xff] }
 0x6bd   :  { %2511 = vmatpush1.bf16.msra.mxu1 %v2510_v18  ;;  %v1504_v18 = vld [vmem:[#allocation2 + $0x370] sm:$0xff] }
 0x6be   :  { %2513 = vmatprep.subr.bf16.mxu1 %v2512_v19  ;;  %v1505_v19 = vld [vmem:[#allocation2 + $0x378] sm:$0xff] }
 0x6bf   :  { %v2580_v21 = vpack.c.bf16 %v1505_v19, %v1504_v18  ;;  %v1133_v18 = vld [vmem:[#allocation4 + $0x1b0] sm:$0xff]  ;;  %v1138_v19 = vld [vmem:[#allocation4 + $0x1d8] sm:$0xff] }
 0x6c1   :  { %2515 = vmatpush1.bf16.msra.mxu1 %v2514_v22  ;;  %v1488_v22 = vld [vmem:[#allocation2 + $0x2f0] sm:$0xff] }
 0x6c2   :  { %2517 = vmatprep.subr.bf16.mxu1 %v2516_v31  ;;  %v1508_v31 = vld [vmem:[#allocation2 + $0x390] sm:$0xff] }
 0x6c5   :  { %2519 = vmatpush1.bf16.msra.mxu1 %v2518_v34  ;;  %v2588_v34 = vpack.c.bf16 %v1509_v32, %v1508_v31  ;;  %v1495_v31 = vld [vmem:[#allocation2 + $0x328] sm:$0xff] }
 0x6c6   :  { %2521 = vmatprep.subr.bf16.mxu1 %v2520_v37  ;;  %v2590_v37 = vpack.c.bf16 %v1493_v36, %v1492_v35  ;;  %v2594_v32 = vpack.c.bf16 %v1495_v31, %v1494_v30  ;;  %v1454_v36 = vsub.s32 0, %v2817_v2 }
 0x6c9   :  { %2523 = vmatpush1.bf16.msra.mxu1 %v2522_v41  ;;  %v1085_v41 = vld [vmem:[#allocation4 + $0x30] sm:$0xff] }
 0x6ca   :  { %2525 = vmatprep.subr.bf16.mxu1 %v2524_v45  ;;  %v2534_v46 = vpack.c.bf16 %v1085_v41, %v1081_v40 }
 0x6cd   :  { %2527 = vmatpush1.bf16.msra.mxu1 %v2526_v48  ;;  %v2536_v48 = vpack.c.bf16 %v1094_v44, %v1090_v43  ;;  %v1512_v44 = vld [vmem:[#allocation2 + $0x3b0] sm:$0xff] }
 0x6ce   :  { %2529 = vmatprep.subr.bf16.mxu1 %v2528_v49  ;;  %v1089_v49 = vld [vmem:[#allocation4 + $0x50] sm:$0xff] }
 0x77f   :  { %v979_v53 = vpop.f32.mrb[14].mxu1 }
 0x780   :  { %2308 = vmatmul.mubr.f32.vlgmr.msra.gmra.mrb[6].mxu0 %v979_v53  ;;  %v2274_v54 = vpop.f32.mrb[15].mxu1  ;;  %v1086_v53 = vld [vmem:[#allocation4 + $0x38] sm:$0xff] }
 0x781   :  { %v2530_v54 = vpack.c.bf16 %v1139_v51, %v1135_v50  ;;  %v2532_v55 = vpack.c.bf16 %v1086_v53, %v1082_v52  ;;  %2567 = vmatpush3.bf16.msra.mxu0 %v2566_v62  ;;  %v1093_v50 = vld [vmem:[#allocation4 + $0x70] sm:$0xff]  ;;  %v1098_v51 = vld [vmem:[#allocation4 + $0x98] sm:$0xff] }
 0x782   :  { %2569 = vmatprep.subr.bf16.mxu0 %v2568_v63  ;;  %v1102_v52 = vld [vmem:[#allocation4 + $0xb8] sm:$0xff]  ;;  %v2538_v53 = vpack.c.bf16 %v1093_v50, %v1089_v49  ;;  %v2546_v63 = vpack.c.bf16 %v1109_v61, %v1105_v60  ;;  %v1531_v49 = vld [vmem:[#allocation2 + $0x448] sm:$0xff]  ;;  %v1517_v60 = vld [vmem:[#allocation2 + $0x3d8] sm:$0xff] }
 0x783   :  { %2531 = vmatpush1.bf16.msra.mxu1 %v2530_v54  ;;  %v2540_v54 = vpack.c.bf16 %v1102_v52, %v1098_v51  ;;  %v1118_v62 = vld [vmem:[#allocation4 + $0x138] sm:$0xff] }
 0x784   :  { %2533 = vmatprep.subr.bf16.mxu1 %v2532_v55  ;;  %v1097_v55 = vld [vmem:[#allocation4 + $0x90] sm:$0xff]  ;;  %v2548_v0 = vpack.c.bf16 %v1118_v62, %v1114_v14  ;;  %v1534_v61 = vld [vmem:[#allocation2 + $0x460] sm:$0xff]  ;;  %v1535_v14 = vld [vmem:[#allocation2 + $0x468] sm:$0xff] }
 0x785   :  { %2571 = vmatpush3.bf16.msra.mxu0 %v2570_v6  ;;  %v2542_v58 = vpack.c.bf16 %v1101_v56, %v1097_v55  ;;  %v1126_v6 = vld [vmem:[#allocation4 + $0x178] sm:$0xff]  ;;  %v1515_v55 = vld [vmem:[#allocation2 + $0x3c8] sm:$0xff]  ;;  %v1532_v56 = vld [vmem:[#allocation2 + $0x450] sm:$0xff] }
 0x786   :  { %2573 = vmatprep.subr.bf16.mxu0 %v2572_v7  ;;  %v2550_v7 = vpack.c.bf16 %v1117_v4, %v1113_v3  ;;  %v2552_v8 = vpack.c.bf16 %v1126_v6, %v1122_v5  ;;  %v1519_v3 = vld [vmem:[#allocation2 + $0x3e8] sm:$0xff]  ;;  %v1536_v4 = vld [vmem:[#allocation2 + $0x470] sm:$0xff]  ;;  %v1537_v5 = vld [vmem:[#allocation2 + $0x478] sm:$0xff] }
 0x789   :  { %2575 = vmatpush3.bf16.msra.mxu0 %v2574_v12  ;;  %v1134_v12 = vld [vmem:[#allocation4 + $0x1b8] sm:$0xff] }
 0x78a   :  { %2577 = vmatprep.subr.bf16.mxu0 %v2576_v13  ;;  %v2554_v13 = vpack.c.bf16 %v1125_v10, %v1121_v9  ;;  %v2556_v15 = vpack.c.bf16 %v1134_v12, %v1130_v11  ;;  %v1521_v9 = vld [vmem:[#allocation2 + $0x3f8] sm:$0xff]  ;;  %v1538_v10 = vld [vmem:[#allocation2 + $0x480] sm:$0xff]  ;;  %v1539_v11 = vld [vmem:[#allocation2 + $0x488] sm:$0xff] }
 0x78d   :  { %2579 = vmatpush3.bf16.msra.mxu0 %v2578_v20  ;;  %v1142_v20 = vld [vmem:[#allocation4 + $0x1f8] sm:$0xff] }
 0x78e   :  { %2581 = vmatprep.subr.bf16.mxu0 %v2580_v21  ;;  %v2558_v21 = vpack.c.bf16 %v1133_v18, %v1129_v16  ;;  %v1523_v16 = vld [vmem:[#allocation2 + $0x408] sm:$0xff]  ;;  %v1540_v18 = vld [vmem:[#allocation2 + $0x490] sm:$0xff] }
 0x853   :  { %v1066_v24 = vpop.f32.mrb[6].mxu0 }
 0x854   :  { %v2931_v25 = vadd.f32 %v1066_v24, %v999_v23  ;;  %v2309_v26 = vpop.f32.mrb[7].mxu0  ;;  %v1489_v23 = vld [vmem:[#allocation2 + $0x2f8] sm:$0xff]  ;;  %v1506_v24 = vld [vmem:[#allocation2 + $0x380] sm:$0xff] }
 0x855   :  { %v1507_v26 = vld [vmem:[#allocation2 + $0x388] sm:$0xff] }
 0x856   :  { %v1070_v27 = vmul.f32 %v2931_v25, %v2931_v25 }
 0x858   :  { %v1072_v28 = vsel %vm1071_vm12, %v1070_v27, 0.0  ;;  %v2582_v27 = vpack.c.bf16 %v1489_v23, %v1488_v22  ;;  %v2560_v22 = vpack.c.bf16 %v1142_v20, %v1138_v19  ;;  %v1137_v23 = vld [vmem:[#allocation4 + $0x1d0] sm:$0xff] }
 0x859   :  { %1073 = vadd.xlane.f32.xlu1 %v1072_v28  ;;  %v2584_v28 = vpack.c.bf16 %v1507_v26, %v1506_v24  ;;  %v1141_v24 = vld [vmem:[#allocation4 + $0x1f0] sm:$0xff] }
 0x85a   :  { %2583 = vmatpush3.bf16.msra.mxu0 %v2582_v27  ;;  %v2562_v26 = vpack.c.bf16 %v1141_v24, %v1137_v23  ;;  %v1510_v27 = vld [vmem:[#allocation2 + $0x3a0] sm:$0xff]  ;;  %v1541_v19 = vld [vmem:[#allocation2 + $0x498] sm:$0xff]  ;;  %v1524_v23 = vld [vmem:[#allocation2 + $0x410] sm:$0xff] }
 0x85b   :  { %2585 = vmatprep.subr.bf16.mxu0 %v2584_v28  ;;  %v1511_v28 = vld [vmem:[#allocation2 + $0x3a8] sm:$0xff]  ;;  %v1525_v24 = vld [vmem:[#allocation2 + $0x418] sm:$0xff] }
 0x85c   :  { %v2592_v29 = vpack.c.bf16 %v1511_v28, %v1510_v27  ;;  %v1542_v27 = vld [vmem:[#allocation2 + $0x4a0] sm:$0xff]  ;;  %v1543_v28 = vld [vmem:[#allocation2 + $0x4a8] sm:$0xff] }
 0x85d   :  { %v2624_v31 = vpack.c.bf16 %v1543_v28, %v1542_v27  ;;  %v1544_v28 = vld [vmem:[#allocation2 + $0x4b0] sm:$0x1] }
 0x85e   :  { %2587 = vmatpush3.bf16.msra.mxu0 %v2586_v33  ;;  %v1528_v33 = vld [vmem:[#allocation2 + $0x430] sm:$0xff] }
 0x85f   :  { %2589 = vmatprep.subr.bf16.mxu0 %v2588_v34  ;;  %v1529_v34 = vld [vmem:[#allocation2 + $0x438] sm:$0xff] }
 0x860   :  { %v2596_v35 = vpack.c.bf16 %v1529_v34, %v1528_v33  ;;  %v1527_v33 = vld [vmem:[#allocation2 + $0x428] sm:$0xff] }
 0x862   :  { %2591 = vmatpush3.bf16.msra.mxu0 %v2590_v37  ;;  %v2944_v37 = vld [vmem:[#allocation4 + $0x220] ss:$8 sm:$0xf] }
 0x863   :  { %2593 = vmatprep.subr.bf16.mxu0 %v2592_v29  ;;  %v2622_v29 = vpack.c.bf16 %v1525_v24, %v1524_v23 }
 0x866   :  { %2595 = vmatpush3.bf16.msra.mxu0 %v2594_v32  ;;  %v1526_v32 = vld [vmem:[#allocation2 + $0x420] sm:$0xff] }
 0x867   :  { %2597 = vmatprep.subr.bf16.mxu0 %v2596_v35 }
 0x8e6   :  { %v1074_v38 = vpop.xlane.xlu1 %1073 }
 0x8e7   :  { %v1075_v39 = vmax.f32 %v1074_v38, 1e-24  ;;  %v1458_v38 = vsub.s32 1, %v2817_v2 }
 0x8e9   :  { %2693 = vrsqrt.f32 %v1075_v39  ;;  %v1455_v39 = vrot.slane %v2944_v37, %v1454_v36  ;;  %v1459_v40 = vrot.slane %v2944_v37, %v1458_v38  ;;  %v2626_v36 = vpack.c.bf16 %v1527_v33, %v1526_v32 }
 0x8f3   :  { %v2694_v42 = vpop.eup %2693 }
 0x8f4   :  { %v2936_v45 = vmul.f32 %v2694_v42, %v2931_v25  ;;  %v1110_v25 = vld [vmem:[#allocation4 + $0xf8] sm:$0xff] }
 0x8f5   :  { %v2544_v59 = vpack.c.bf16 %v1110_v25, %v1106_v57  ;;  %v1533_v57 = vld [vmem:[#allocation2 + $0x458] sm:$0xff] }
 0x8f6   :  { %v1078_v47 = vand.u32 2147483647, %v2936_v45 }
 0x8f8   :  { %1372 = vmatmul.mubr.f32.vlgmr.msra.gmra.mrb[16].mxu1 %v1078_v47 }
 0x8f9   :  { %2535 = vmatpush1.bf16.msra.mxu1 %v2534_v46  ;;  %1442 = vmatprep.mubr.f32.mxu1 %v2749_v1  ;;  %v1513_v46 = vld [vmem:[#allocation2 + $0x3b8] sm:$0xff] }
 0x8fa   :  { %2537 = vmatprep.subr.bf16.mxu1 %v2536_v48  ;;  %v1530_v48 = vld [vmem:[#allocation2 + $0x440] sm:$0xff]  ;;  %v2598_v51 = vpack.c.bf16 %v1513_v46, %v1512_v44  ;;  %v1689_v46 = vld [vmem:[#allocation2 + $0x4d0] sm:$0xff] }
 0x8fd   :  { %2539 = vmatpush1.bf16.msra.mxu1 %v2538_v53  ;;  %v2600_v53 = vpack.c.bf16 %v1531_v49, %v1530_v48  ;;  %v1690_v48 = vld [vmem:[#allocation2 + $0x4d8] sm:$0xff]  ;;  %v1691_v49 = vld [vmem:[#allocation2 + $0x4e0] sm:$0xff] }
 0x8fe   :  { %2541 = vmatprep.subr.bf16.mxu1 %v2540_v54  ;;  %v1514_v54 = vld [vmem:[#allocation2 + $0x3c0] sm:$0xff] }
 0x8ff   :  { %v2602_v25 = vpack.c.bf16 %v1515_v55, %v1514_v54  ;;  %v1695_v54 = vld [vmem:[#allocation2 + $0x500] sm:$0xff] }
 0x901   :  { %2543 = vmatpush1.bf16.msra.mxu1 %v2542_v58  ;;  %v2604_v58 = vpack.c.bf16 %v1533_v57, %v1532_v56  ;;  %v1696_v56 = vld [vmem:[#allocation2 + $0x508] sm:$0xff]  ;;  %v1697_v57 = vld [vmem:[#allocation2 + $0x510] sm:$0xff] }
 0x902   :  { %2545 = vmatprep.subr.bf16.mxu1 %v2544_v59  ;;  %v1516_v59 = vld [vmem:[#allocation2 + $0x3d0] sm:$0xff] }
 0x903   :  { %v2606_v62 = vpack.c.bf16 %v1517_v60, %v1516_v59  ;;  %v1699_v59 = vld [vmem:[#allocation2 + $0x520] sm:$0xff] }
 0x905   :  { %2547 = vmatpush1.bf16.msra.mxu1 %v2546_v63  ;;  %v2608_v63 = vpack.c.bf16 %v1535_v14, %v1534_v61  ;;  %v1700_v61 = vld [vmem:[#allocation2 + $0x528] sm:$0xff]  ;;  %v1701_v14 = vld [vmem:[#allocation2 + $0x530] sm:$0xff] }
 0x906   :  { %2549 = vmatprep.subr.bf16.mxu1 %v2548_v0  ;;  %v1518_v0 = vld [vmem:[#allocation2 + $0x3e0] sm:$0xff] }
 0x907   :  { %v2610_v6 = vpack.c.bf16 %v1519_v3, %v1518_v0  ;;  %v1775_v0 = vld [vmem:[#allocation2 + $0x548] sm:$0xff]  ;;  %v1776_v3 = vld [vmem:[#allocation2 + $0x550] sm:$0xff] }
 0x909   :  { %2551 = vmatpush1.bf16.msra.mxu1 %v2550_v7  ;;  %v2612_v7 = vpack.c.bf16 %v1537_v5, %v1536_v4  ;;  %v1777_v5 = vld [vmem:[#allocation2 + $0x558] sm:$0xff] }
 0x90a   :  { %2553 = vmatprep.subr.bf16.mxu1 %v2552_v8  ;;  %v1520_v8 = vld [vmem:[#allocation2 + $0x3f0] sm:$0xff] }
 0x90b   :  { %v2614_v12 = vpack.c.bf16 %v1521_v9, %v1520_v8  ;;  %v1779_v8 = vld [vmem:[#allocation2 + $0x568] sm:$0xff] }
 0x90d   :  { %2555 = vmatpush1.bf16.msra.mxu1 %v2554_v13  ;;  %v2616_v13 = vpack.c.bf16 %v1539_v11, %v1538_v10  ;;  %v1780_v10 = vld [vmem:[#allocation2 + $0x570] sm:$0xff]  ;;  %v1781_v11 = vld [vmem:[#allocation2 + $0x578] sm:$0xff] }
 0x90e   :  { %2557 = vmatprep.subr.bf16.mxu1 %v2556_v15  ;;  %v1522_v15 = vld [vmem:[#allocation2 + $0x400] sm:$0xff] }
 0x90f   :  { %v2618_v20 = vpack.c.bf16 %v1523_v16, %v1522_v15  ;;  %v1783_v15 = vld [vmem:[#allocation2 + $0x588] sm:$0xff] }
 0x911   :  { %2559 = vmatpush1.bf16.msra.mxu1 %v2558_v21  ;;  %v2620_v21 = vpack.c.bf16 %v1541_v19, %v1540_v18  ;;  %v1784_v18 = vld [vmem:[#allocation2 + $0x590] sm:$0xff]  ;;  %v1785_v19 = vld [vmem:[#allocation2 + $0x598] sm:$0xff] }
 0x912   :  { %2561 = vmatprep.subr.bf16.mxu1 %v2560_v22  ;;  %v1462_v22 = vsub.s32 2, %v2817_v2 }
 0x914   :  { %v1463_v30 = vrot.slane %v2944_v37, %v1462_v22  ;;  %v1787_v22 = vld [vmem:[#allocation2 + $0x5a8] sm:$0xff] }
 0x915   :  { %2563 = vmatpush1.bf16.msra.mxu1 %v2562_v26  ;;  %v1466_v26 = vsub.s32 3, %v2817_v2 }
 0x916   :  { %2628 = vmatprep.subr.bf16.mxu1 %v2751_v17 }
 0x917   :  { %v1467_v34 = vrot.slane %v2944_v37, %v1466_v26  ;;  %v1688_v37 = vld [vmem:[#allocation2 + $0x4c8] sm:$0xff] }
 0x918   :  { %1443 = vmatmul.mubr.f32.vlgmr.msra.gmra.mrb[18].mxu1 %v1078_v47 }
 0x919   :  { %2342 = vmatprep.mubr.msk.f32.mxu1 %vm2750_vm0, %v2749_v1 }
 0x9cb   :  { %v1373_v41 = vpop.f32.mrb[16].mxu1 }
 0x9cc   :  { %v1472_v42 = vadd.f32 %v1455_v39, %v1373_v41  ;;  %v1375_v43 = vpop.f32.mrb[17].mxu1 }
 0x9cd   :  { %v1473_v47 = vadd.f32 %v1459_v40, %v1375_v43  ;;  %v1687_v43 = vld [vmem:[#allocation2 + $0x4c0] sm:$0xff] }
 0x9ce   :  { %v1476_v52 = vmax.f32 %v1472_v42, 0.0  ;;  %v1686_v42 = vld [vmem:[#allocation2 + $0x4b8] sm:$0xff] }
 0x9cf   :  { %v1477_v50 = vmax.f32 %v1473_v47, 0.0  ;;  %v2629_v44 = vpack.c.bf16 %v1687_v43, %v1686_v42  ;;  %v2632_v47 = vpack.c.bf16 %v1689_v46, %v1688_v37  ;;  %v1790_v42 = vld [vmem:[#allocation2 + $0x5c0] sm:$0x1] }
 0x9d1   :  { %1609 = vmatprep.mubr.f32.mxu0 %v1477_v50  ;;  %2630 = vmatpush3.bf16.msra.mxu1 %v2629_v44  ;;  %v2635_v50 = vpack.c.bf16 %v1691_v49, %v1690_v48 }
 0x9d2   :  { %1610 = vmatmul.mubr.f32.vlgmr.msra.gmra.mrb[8].mxu0 %v1476_v52  ;;  %2631 = vmatprep.subr.bf16.mxu1 %v2751_v17  ;;  %v1693_v52 = vld [vmem:[#allocation2 + $0x4f0] sm:$0xff] }
 0x9d3   :  { %2599 = vmatpush3.bf16.msra.mxu0 %v2598_v51  ;;  %v1692_v51 = vld [vmem:[#allocation2 + $0x4e8] sm:$0xff] }
 0x9d4   :  { %2601 = vmatprep.subr.bf16.mxu0 %v2600_v53  ;;  %v2638_v53 = vpack.c.bf16 %v1693_v52, %v1692_v51 }
 0x9d5   :  { %2633 = vmatpush3.bf16.msra.mxu1 %v2632_v47 }
 0x9d6   :  { %2634 = vmatprep.subr.bf16.mxu1 %v2751_v17 }
 0x9d7   :  { %2603 = vmatpush3.bf16.msra.mxu0 %v2602_v25  ;;  %v2644_v25 = vpack.c.bf16 %v1697_v57, %v1696_v56 }
 0x9d8   :  { %2605 = vmatprep.subr.bf16.mxu0 %v2604_v58  ;;  %v1698_v58 = vld [vmem:[#allocation2 + $0x518] sm:$0xff] }
 0x9d9   :  { %2636 = vmatpush3.bf16.msra.mxu1 %v2635_v50  ;;  %v2647_v60 = vpack.c.bf16 %v1699_v59, %v1698_v58 }
 0x9da   :  { %2637 = vmatprep.subr.bf16.mxu1 %v2751_v17 }
 0x9db   :  { %2607 = vmatpush3.bf16.msra.mxu0 %v2606_v62  ;;  %v2650_v62 = vpack.c.bf16 %v1701_v14, %v1700_v61 }
 0x9dc   :  { %2609 = vmatprep.subr.bf16.mxu0 %v2608_v63  ;;  %v1774_v63 = vld [vmem:[#allocation2 + $0x540] sm:$0xff] }
 0x9dd   :  { %2639 = vmatpush3.bf16.msra.mxu1 %v2638_v53  ;;  %v2653_v4 = vpack.c.bf16 %v1775_v0, %v1774_v63 }
 0x9de   :  { %2640 = vmatprep.subr.bf16.mxu1 %v2751_v17 }
 0x9df   :  { %2611 = vmatpush3.bf16.msra.mxu0 %v2610_v6  ;;  %v2656_v6 = vpack.c.bf16 %v1777_v5, %v1776_v3 }
 0x9e0   :  { %2613 = vmatprep.subr.bf16.mxu0 %v2612_v7  ;;  %v1778_v7 = vld [vmem:[#allocation2 + $0x560] sm:$0xff] }
 0x9e1   :  { %v2659_v9 = vpack.c.bf16 %v1779_v8, %v1778_v7 }
 0x9e3   :  { %2615 = vmatpush3.bf16.msra.mxu0 %v2614_v12  ;;  %v2662_v12 = vpack.c.bf16 %v1781_v11, %v1780_v10 }
 0x9e4   :  { %2617 = vmatprep.subr.bf16.mxu0 %v2616_v13  ;;  %v1782_v13 = vld [vmem:[#allocation2 + $0x580] sm:$0xff] }
 0x9e5   :  { %v2665_v16 = vpack.c.bf16 %v1783_v15, %v1782_v13 }
 0x9e7   :  { %2619 = vmatpush3.bf16.msra.mxu0 %v2618_v20  ;;  %v2668_v20 = vpack.c.bf16 %v1785_v19, %v1784_v18 }
 0x9e8   :  { %2621 = vmatprep.subr.bf16.mxu0 %v2620_v21  ;;  %v1786_v21 = vld [vmem:[#allocation2 + $0x5a0] sm:$0xff] }
 0x9e9   :  { %v2671_v23 = vpack.c.bf16 %v1787_v22, %v1786_v21 }
 0x9eb   :  { %v1444_v35 = vpop.f32.mrb[18].mxu1  ;;  %2623 = vmatpush3.bf16.msra.mxu0 %v2622_v29 }
 0x9ec   :  { %v1474_v38 = vadd.f32 %v1463_v30, %v1444_v35  ;;  %v1446_v39 = vpop.f32.mrb[19].mxu1  ;;  %2625 = vmatprep.subr.bf16.mxu0 %v2624_v31  ;;  %v1788_v35 = vld [vmem:[#allocation2 + $0x5b0] sm:$0xff] }
 0x9ed   :  { %v1475_v40 = vadd.f32 %v1467_v34, %v1446_v39  ;;  %v1702_v39 = vld [vmem:[#allocation2 + $0x538] sm:$0x1] }
 0x9ee   :  { %v1478_v41 = vmax.f32 %v1474_v38, 0.0 }
 0x9ef   :  { %v1479_v2 = vmax.f32 %v1475_v40, 0.0  ;;  %2627 = vmatpush3.bf16.msra.mxu0 %v2626_v36  ;;  %v1789_v36 = vld [vmem:[#allocation2 + $0x5b8] sm:$0xff] }
 0x9f0   :  { %2652 = vmatprep.subr.bf16.mxu0 %v2751_v17  ;;  %v2674_v38 = vpack.c.bf16 %v1789_v36, %v1788_v35 }
 0x9f1   :  { %1679 = vmatprep.mubr.f32.mxu0 %v1479_v2 }
 0x9f2   :  { %1680 = vmatmul.mubr.f32.vlgmr.msra.gmra.mrb[10].mxu0 %v1478_v41 }
 0x9f3   :  { %2377 = vmatprep.mubr.msk.f32.mxu0 %vm2750_vm0, %v2749_v1  ;;  %v1694_v1 = vld [vmem:[#allocation2 + $0x4f8] sm:$0xff]  ;;  %2654 = vmatpush3.bf16.msra.mxu0 %v2653_v4 }
 0x9f4   :  { %v2641_v55 = vpack.c.bf16 %v1695_v54, %v1694_v1  ;;  %2655 = vmatprep.subr.bf16.mxu0 %v2751_v17 }
 0x9f6   :  { %2642 = vmatpush3.bf16.msra.mxu1 %v2641_v55 }
 0x9f7   :  { %2643 = vmatprep.subr.bf16.mxu1 %v2751_v17  ;;  %2657 = vmatpush3.bf16.msra.mxu0 %v2656_v6 }
 0x9f8   :  { %2658 = vmatprep.subr.bf16.mxu0 %v2751_v17 }
 0x9fa   :  { %2645 = vmatpush3.bf16.msra.mxu1 %v2644_v25 }
 0x9fb   :  { %2646 = vmatprep.subr.bf16.mxu1 %v2751_v17  ;;  %2660 = vmatpush3.bf16.msra.mxu0 %v2659_v9 }
 0x9fc   :  { %2661 = vmatprep.subr.bf16.mxu0 %v2751_v17 }
 0x9fe   :  { %2648 = vmatpush3.bf16.msra.mxu1 %v2647_v60 }
 0x9ff   :  { %2649 = vmatprep.subr.bf16.mxu1 %v2751_v17  ;;  %2663 = vmatpush3.bf16.msra.mxu0 %v2662_v12 }
 0xa00   :  { %2664 = vmatprep.subr.bf16.mxu0 %v2751_v17 }
 0xa02   :  { %2651 = vmatpush3.bf16.msra.mxu1 %v2650_v62 }
 0xa03   :  { %2666 = vmatpush3.bf16.msra.mxu0 %v2665_v16 }
 0xa04   :  { %2667 = vmatprep.subr.bf16.mxu0 %v2751_v17 }
 0xa07   :  { %2669 = vmatpush3.bf16.msra.mxu0 %v2668_v20 }
 0xa08   :  { %2670 = vmatprep.subr.bf16.mxu0 %v2751_v17 }
 0xa0b   :  { %2672 = vmatpush3.bf16.msra.mxu0 %v2671_v23 }
 0xa0c   :  { %2673 = vmatprep.subr.bf16.mxu0 %v2751_v17 }
 0xa0f   :  { %2675 = vmatpush3.bf16.msra.mxu0 %v2674_v38 }
 0xaa5   :  { %v2028_v24 = vpop.f32.mrb[8].mxu0 }
 0xaa6   :  { %v2029_v26 = vpop.f32.mrb[9].mxu0 }
 0xaa7   :  { %v2030_v27 = vadd.f32 %v2029_v26, %v2028_v24 }
 0xaa9   :  { %v1612_v31 = vadd.f32 %v2030_v27, %v1544_v28 }
 0xac5   :  { %v2063_v29 = vpop.f32.mrb[10].mxu0 }
 0xac6   :  { %v2064_v30 = vpop.f32.mrb[11].mxu0 }
 0xac7   :  { %v2065_v32 = vadd.f32 %v2064_v30, %v2063_v29 }
 0xac9   :  { %v1682_v33 = vadd.f32 %v2065_v32, %v1612_v31 }
 0xacb   :  { %v1685_v34 = vmax.f32 %v1682_v33, 0.0 }
 0xacd   :  { %2343 = vmatmul.mubr.f32.vlgmr.msra.gmra.mrb[20].mxu1 %v1685_v34 }
 0xba0   :  { %v1769_v40 = vpop.f32.mrb[20].mxu1 }
 0xba1   :  { %v1770_v2 = vadd.f32 %v1769_v40, %v1702_v39  ;;  %v2344_v41 = vpop.f32.mrb[21].mxu1 }
 0xba3   :  { %v1773_v17 = vmax.f32 %v1770_v2, 0.0 }
 0xba5   :  { %2378 = vmatmul.mubr.f32.vlgmr.msra.gmra.mrb[12].mxu0 %v1773_v17 }
 0xc78   :  { %v1857_v43 = vpop.f32.mrb[12].mxu0 }
 0xc79   :  { %v1858_v37 = vadd.f32 %v1857_v43, %v1790_v42  ;;  %v2379_v44 = vpop.f32.mrb[13].mxu0 }
 0xc7b   :  { %v1861_v46 = vadd.f32 %v1858_v37, %v2936_v45 }
 0xc7d   :  { %1862 = vst [vmem:[%s2980_s6] sm:$0x1] %v1861_v46 }
 0xc7e   :  { %1867 = vsyncpa [#allocation3], 1 }
 0xc7f   :  { %1868 = vsyncpa [#allocation5], 1 }

</bundles_post_ra>
